<compile_context>
chip_gen: v6e
topology: v6e:2x2x1
jax: 0.10.0
libtpu: 0.0.40
codegen_flags: <defaults>
</compile_context>

<pallas_src>
import math

import jax
import jax.numpy as jnp
from jax import lax
from jax.experimental import pallas as pl
from jax.experimental.pallas import tpu as pltpu

# ------------------------------- config -----------------------------------
B = 2        # batch
S = 16       # sequence length
V = 64       # vocab size (synthetic)
H = 128      # hidden size            (module default is 768; small here)
NH = 2       # attention heads
DH = H // NH
FF = 256     # FFN intermediate size
L = 2        # encoder layers
C = 6        # num_classes
CPAD = 128   # lane-dense padded logits width (wrapper slices back to C)
LN_EPS = 1e-12
DR_RATE = 0.5  # ElectraClassifier.build_model() uses dr_rate=0.5
BS = B * S

# ----------------------- packed small-parameter slab -----------------------
PVEC_W = 3 * H           # 384 lanes (widest vector = fused qkv bias)
_ROWS_PER_LAYER = 8      # bqkv, bo, ln1_g, ln1_b, bi, bo2, ln2_g, ln2_b
ROW_EMB_G, ROW_EMB_B = 0, 1
(OFF_BQKV, OFF_BO, OFF_LN1G, OFF_LN1B,
 OFF_BI, OFF_BO2, OFF_LN2G, OFF_LN2B) = range(_ROWS_PER_LAYER)
ROW_BP = 2 + L * _ROWS_PER_LAYER
ROW_BC = ROW_BP + 1
PVEC_ROWS = ROW_BC + 1   # 20


def _layer_row(l):
    return 2 + l * _ROWS_PER_LAYER


# ------------------------- shared math (kernel + ref) ----------------------
def _layernorm(x, g, b):
    mu = jnp.mean(x, axis=-1, keepdims=True)
    var = jnp.mean(jnp.square(x - mu), axis=-1, keepdims=True)
    return (x - mu) * lax.rsqrt(var + LN_EPS) * g + b


def _gelu(x):
    # tanh-approximate GELU (BERT/ELECTRA style)
    return 0.5 * x * (1.0 + jnp.tanh(0.7978845608028654 * (x + 0.044715 * x * x * x)))


def _gather_rows(x, rows):
    return jnp.concatenate([x[r:r + 1, :] for r in rows], axis=0)


def _encoder_forward(x, attn_bias, drop_mask, p, pool_rows):
    """Shared forward.

    x:(R,H) f32 embedded activations, attn_bias broadcastable to (R,R) additive
    bias, drop_mask:(P,H) pre-scaled dropout keep mask with P == len(pool_rows).
    Returns (P, CPAD) padded logits.
    """
    bf16 = jnp.bfloat16
    x = _layernorm(x, p["emb_ln_g"], p["emb_ln_b"])            # (R,H) f32
    scale = 1.0 / math.sqrt(DH)

    for l in range(L):
        # Fused QKV projection, single bf16 conversion of the whole (R,3H).
        qkv = (jnp.dot(x.astype(bf16), p["wqkv"][l],
                       preferred_element_type=jnp.float32) + p["bqkv"][l]).astype(bf16)
        q = qkv[:, 0:H]
        k = qkv[:, H:2 * H]
        v = qkv[:, 2 * H:3 * H]

        # Per-head attention; output projection accumulated per head so no
        # (R,H) ctx concat is materialized.
        attn = None
        for h in range(NH):
            qh = q[:, h * DH:(h + 1) * DH]
            kh = k[:, h * DH:(h + 1) * DH]
            vh = v[:, h * DH:(h + 1) * DH]
            # Contract on last dims (no explicit .T).
            # TODO(synk): verify with pl.lower_as_mlir that this does not emit
            # an XLU transpose of K at real sequence lengths.
            s = lax.dot_general(
                qh, kh, dimension_numbers=(((1,), (1,)), ((), ())),
                preferred_element_type=jnp.float32) * scale + attn_bias     # (R,R)
            s = s - jnp.max(s, axis=-1, keepdims=True)
            pr = jnp.exp(s)
            pr = pr / jnp.sum(pr, axis=-1, keepdims=True)      # exact softmax
            ctx = jnp.dot(pr.astype(bf16), vh,
                          preferred_element_type=jnp.float32)               # (R,DH)
            part = jnp.dot(ctx.astype(bf16), p["wo"][l][h * DH:(h + 1) * DH, :],
                           preferred_element_type=jnp.float32)              # (R,H)
            attn = part if attn is None else attn + part

        x = _layernorm(x + attn + p["bo"][l], p["ln1_g"][l], p["ln1_b"][l])

        # Last layer: only the pooler rows are consumed downstream.
        if l == L - 1:
            x = _gather_rows(x, pool_rows)

        hdn = _gelu(jnp.dot(x.astype(bf16), p["wi"][l],
                            preferred_element_type=jnp.float32) + p["bi"][l])
        ffn = jnp.dot(hdn.astype(bf16), p["wo2"][l],
                      preferred_element_type=jnp.float32) + p["bo2"][l]
        x = _layernorm(x + ffn, p["ln2_g"][l], p["ln2_b"][l])

    # TODO(synk): HF ElectraForSequenceClassification has no BERT-style pooler;
    # the reference module unpacks a "pooler" output anyway, so a BERT-style
    # pooler (first token -> dense -> tanh) is synthesized here.
    pooled = jnp.tanh(jnp.dot(x.astype(bf16), p["wp"],
                              preferred_element_type=jnp.float32) + p["bp"])  # (P,H)
    # Train-mode dropout with a pre-scaled keep mask (eval() would be identity).
    dropped = pooled * drop_mask
    return jnp.dot(dropped.astype(bf16), p["wc_pad"],
                   preferred_element_type=jnp.float32) + p["bc_pad"]          # (P,CPAD)


def _embed(params, token_ids, segment_ids):
    """Embedding gather in plain JAX (no one-hot matmuls): (B,S,H)."""
    return (jnp.take(params["tok_emb"], token_ids, axis=0)
            + jnp.take(params["seg_emb"], segment_ids, axis=0)
            + params["pos_emb"][None, :, :])


# -------------------- parameter views (slab <-> arrays) --------------------
def pack_small_params(params):
    """Pack every small f32 vector into one lane-dense (PVEC_ROWS, 3H) slab."""
    def pad_row(v):
        return jnp.pad(v, ((0, 0), (0, PVEC_W - v.shape[1])))

    rows = [pad_row(params["emb_ln_g"]), pad_row(params["emb_ln_b"])]
    for l in range(L):
        rows += [pad_row(params["bqkv"][l]), pad_row(params["bo"][l]),
                 pad_row(params["ln1_g"][l]), pad_row(params["ln1_b"][l]),
                 pad_row(params["bi"][l]), pad_row(params["bo2"][l]),
                 pad_row(params["ln2_g"][l]), pad_row(params["ln2_b"][l])]
    rows += [pad_row(params["bp"]), pad_row(params["bc_pad"])]
    slab = jnp.concatenate(rows, axis=0)
    assert slab.shape == (PVEC_ROWS, PVEC_W)
    return slab


def _params_from_refs(pvec_ref, wqkv_ref, wo_ref, wi_ref, wo2_ref, wp_ref, wc_ref):
    def vrow(r, w):
        return pvec_ref[r:r + 1, 0:w]          # static lane-aligned slice

    p = {"emb_ln_g": vrow(ROW_EMB_G, H), "emb_ln_b": vrow(ROW_EMB_B, H),
         "wp": wp_ref[...], "bp": vrow(ROW_BP, H),
         "wc_pad": wc_ref[...], "bc_pad": vrow(ROW_BC, CPAD),
         "wqkv": [wqkv_ref[l] for l in range(L)],
         "wo": [wo_ref[l] for l in range(L)],
         "wi": [wi_ref[l] for l in range(L)],
         "wo2": [wo2_ref[l] for l in range(L)],
         "bqkv": [], "bo": [], "ln1_g": [], "ln1_b": [],
         "bi": [], "bo2": [], "ln2_g": [], "ln2_b": []}
    for l in range(L):
        base = _layer_row(l)
        p["bqkv"].append(vrow(base + OFF_BQKV, 3 * H))
        p["bo"].append(vrow(base + OFF_BO, H))
        p["ln1_g"].append(vrow(base + OFF_LN1G, H))
        p["ln1_b"].append(vrow(base + OFF_LN1B, H))
        p["bi"].append(vrow(base + OFF_BI, FF))
        p["bo2"].append(vrow(base + OFF_BO2, H))
        p["ln2_g"].append(vrow(base + OFF_LN2G, H))
        p["ln2_b"].append(vrow(base + OFF_LN2B, H))
    return p


def _params_from_arrays(params):
    p = {"emb_ln_g": params["emb_ln_g"], "emb_ln_b": params["emb_ln_b"],
         "wp": params["wp"], "bp": params["bp"],
         "wc_pad": params["wc_pad"], "bc_pad": params["bc_pad"]}
    for name in ("wqkv", "bqkv", "wo", "bo", "ln1_g", "ln1_b",
                 "wi", "bi", "wo2", "bo2", "ln2_g", "ln2_b"):
        p[name] = [params[name][l] for l in range(L)]
    return p


# ------------------------------- Pallas kernel ------------------------------
def electra_classifier_kernel(x_ref, bias_ref, dmask_ref, pvec_ref,
                              wqkv_ref, wo_ref, wi_ref, wo2_ref, wp_ref, wc_ref,
                              out_ref):
    p = _params_from_refs(pvec_ref, wqkv_ref, wo_ref, wi_ref, wo2_ref,
                          wp_ref, wc_ref)
    pool_rows = tuple(b * S for b in range(B))          # row b*S == [CLS] of example b
    out_ref[...] = _encoder_forward(x_ref[...], bias_ref[...], dmask_ref[...],
                                    p, pool_rows)        # (B, CPAD)


def electra_classifier_forward(params, token_ids, segment_ids, attention_mask,
                               drop_keep_mask):
    # Glue in plain JAX: embedding gather, block-diagonal additive attention
    # bias (prevents cross-example attention in the flattened layout), param
    # slab packing.
    x = _embed(params, token_ids, segment_ids).reshape(BS, H)        # (B*S, H)

    batch_of = jnp.arange(BS) // S
    same_batch = batch_of[:, None] == batch_of[None, :]
    key_valid = attention_mask.reshape(BS)[None, :] > 0
    attn_bias = jnp.where(same_batch & key_valid, 0.0, -1e9).astype(jnp.float32)  # (BS,BS)

    pvec = pack_small_params(params)

    n_in = 10
    vmem = pltpu.MemorySpace.VMEM
    logits_padded = pl.pallas_call(
        electra_classifier_kernel,
        out_shape=jax.ShapeDtypeStruct((B, CPAD), jnp.float32),
        # No grid: one kernel invocation covers the whole batch; every input is
        # a single whole-array VMEM block (single DMA each, no per-step cost).
        in_specs=[pl.BlockSpec(memory_space=vmem)] * n_in,
        out_specs=pl.BlockSpec(memory_space=vmem),
    )(x, attn_bias, drop_keep_mask, pvec,
      params["wqkv"], params["wo"], params["wi"], params["wo2"],
      params["wp"], params["wc_pad"])
    return logits_padded[:, :C]


# ------------------------------- reference ---------------------------------
def reference_forward(params, token_ids, segment_ids, attention_mask,
                      drop_keep_mask):
    """Per-example (vmapped) pure-JAX forward; also checks the block-diagonal
    batching trick used by the kernel."""
    p = _params_from_arrays(params)
    x_emb = _embed(params, token_ids, segment_ids)                        # (B,S,H)
    bias = ((1.0 - attention_mask.astype(jnp.float32)) * -1e9)[:, None, :]  # (B,1,S)
    dmask = drop_keep_mask[:, None, :]                                    # (B,1,H)

    def one(xe, ab, dm):
        return _encoder_forward(xe, ab, dm, p, pool_rows=(0,))[0]         # (CPAD,)

    logits_padded = jax.vmap(one)(x_emb, bias, dmask)
    return logits_padded[:, :C]


# ------------------------------- params ------------------------------------
def init_params(key):
    cnt = [0]

    def nxt():
        cnt[0] += 1
        return jax.random.fold_in(key, cnt[0])

    def nrm(shape, scale=0.02):
        return scale * jax.random.normal(nxt(), shape, jnp.float32)

    bf16 = jnp.bfloat16
    p = {}
    # Embedding tables stay f32 (gathered in the wrapper, layernormed in f32).
    p["tok_emb"] = nrm((V, H))
    p["seg_emb"] = nrm((2, H))
    p["pos_emb"] = nrm((S, H))
    p["emb_ln_g"] = jnp.ones((1, H), jnp.float32)
    p["emb_ln_b"] = jnp.zeros((1, H), jnp.float32)
    # Fused QKV: (L, H, 3H) bf16 weights; lane-dense fused biases (L, 1, 3H) f32.
    p["wqkv"] = nrm((L, H, 3 * H)).astype(bf16)
    p["bqkv"] = nrm((L, 1, 3 * H))
    p["wo"] = nrm((L, H, H)).astype(bf16)
    p["bo"] = nrm((L, 1, H))
    p["ln1_g"] = jnp.ones((L, 1, H), jnp.float32)
    p["ln1_b"] = jnp.zeros((L, 1, H), jnp.float32)
    p["wi"] = nrm((L, H, FF)).astype(bf16)
    p["bi"] = nrm((L, 1, FF))
    p["wo2"] = nrm((L, FF, H)).astype(bf16)
    p["bo2"] = nrm((L, 1, H))
    p["ln2_g"] = jnp.ones((L, 1, H), jnp.float32)
    p["ln2_b"] = jnp.zeros((L, 1, H), jnp.float32)
    p["wp"] = nrm((H, H)).astype(bf16)
    p["bp"] = jnp.zeros((1, H), jnp.float32)
    # Classifier padded lane-dense to CPAD (extra columns are zero).
    wc = nrm((H, C))
    p["wc_pad"] = jnp.pad(wc, ((0, 0), (0, CPAD - C))).astype(bf16)
    p["bc_pad"] = jnp.zeros((1, CPAD), jnp.float32)
    return p


# --------------------------------- main -------------------------------------
if __name__ == "__main__":
    key = jax.random.PRNGKey(0)
    k_par, k_tok, k_drop = jax.random.split(key, 3)

    params = init_params(k_par)
    token_ids = jax.random.randint(k_tok, (B, S), 0, V, dtype=jnp.int32)
    segment_ids = jnp.concatenate(
        [jnp.zeros((B, S // 2), jnp.int32), jnp.ones((B, S - S // 2), jnp.int32)],
        axis=1)
    lengths = jnp.array([S, S - 6], dtype=jnp.int32)
    attention_mask = (jnp.arange(S)[None, :] < lengths[:, None]).astype(jnp.float32)

    # Dropout keep-mask (train-mode dropout, deterministic RNG), pre-scaled 1/(1-p).
    keep = jax.random.bernoulli(k_drop, p=1.0 - DR_RATE, shape=(B, H))
    drop_keep_mask = keep.astype(jnp.float32) / (1.0 - DR_RATE)

    logits = electra_classifier_forward(params, token_ids, segment_ids,
                                        attention_mask, drop_keep_mask)
    logits = jax.block_until_ready(logits)

    ref = reference_forward(params, token_ids, segment_ids, attention_mask,
                            drop_keep_mask)
    assert logits.shape == (B, C)
    assert jnp.allclose(logits, ref, atol=1e-2, rtol=1e-2), (logits, ref)
    print("KERNEL_OK")
</pallas_src>

<mosaic_0001>
module attributes {stable_mosaic.version = 11 : i64} {
  func.func @electra_classifier_kernel(%arg0: memref<32x128xf32, #tpu.memory_space<vmem>>, %arg1: memref<32x32xf32, #tpu.memory_space<vmem>>, %arg2: memref<2x128xf32, #tpu.memory_space<vmem>>, %arg3: memref<20x384xf32, #tpu.memory_space<vmem>>, %arg4: memref<2x128x384xbf16, #tpu.memory_space<vmem>>, %arg5: memref<2x128x128xbf16, #tpu.memory_space<vmem>>, %arg6: memref<2x128x256xbf16, #tpu.memory_space<vmem>>, %arg7: memref<2x256x128xbf16, #tpu.memory_space<vmem>>, %arg8: memref<128x128xbf16, #tpu.memory_space<vmem>>, %arg9: memref<128x128xbf16, #tpu.memory_space<vmem>>, %arg10: memref<2x128xf32, #tpu.memory_space<vmem>>) attributes {dimension_semantics = [], scalar_prefetch = 0 : i64, scratch_operands = 0 : i64, tpu.core_type = #tpu.core_type<tc>} {
    %c0 = arith.constant 0 : index
    %c0_0 = arith.constant 0 : index
    %0 = vector.load %arg3[%c0, %c0_0] : memref<20x384xf32, #tpu.memory_space<vmem>>, vector<1x128xf32>
    %c1 = arith.constant 1 : index
    %c0_1 = arith.constant 0 : index
    %1 = vector.load %arg3[%c1, %c0_1] : memref<20x384xf32, #tpu.memory_space<vmem>>, vector<1x128xf32>
    %c0_2 = arith.constant 0 : index
    %c0_3 = arith.constant 0 : index
    %2 = vector.load %arg8[%c0_2, %c0_3] : memref<128x128xbf16, #tpu.memory_space<vmem>>, vector<128x128xbf16>
    %c18 = arith.constant 18 : index
    %c0_4 = arith.constant 0 : index
    %3 = vector.load %arg3[%c18, %c0_4] : memref<20x384xf32, #tpu.memory_space<vmem>>, vector<1x128xf32>
    %c0_5 = arith.constant 0 : index
    %c0_6 = arith.constant 0 : index
    %4 = vector.load %arg9[%c0_5, %c0_6] : memref<128x128xbf16, #tpu.memory_space<vmem>>, vector<128x128xbf16>
    %c19 = arith.constant 19 : index
    %c0_7 = arith.constant 0 : index
    %5 = vector.load %arg3[%c19, %c0_7] : memref<20x384xf32, #tpu.memory_space<vmem>>, vector<1x128xf32>
    %c0_8 = arith.constant 0 : index
    %c0_9 = arith.constant 0 : index
    %c0_10 = arith.constant 0 : index
    %6 = vector.load %arg4[%c0_8, %c0_9, %c0_10] : memref<2x128x384xbf16, #tpu.memory_space<vmem>>, vector<1x128x384xbf16>
    %7 = vector.shape_cast %6 : vector<1x128x384xbf16> to vector<128x384xbf16>
    %c1_11 = arith.constant 1 : index
    %c0_12 = arith.constant 0 : index
    %c0_13 = arith.constant 0 : index
    %8 = vector.load %arg4[%c1_11, %c0_12, %c0_13] : memref<2x128x384xbf16, #tpu.memory_space<vmem>>, vector<1x128x384xbf16>
    %9 = vector.shape_cast %8 : vector<1x128x384xbf16> to vector<128x384xbf16>
    %c0_14 = arith.constant 0 : index
    %c0_15 = arith.constant 0 : index
    %c0_16 = arith.constant 0 : index
    %10 = vector.load %arg5[%c0_14, %c0_15, %c0_16] : memref<2x128x128xbf16, #tpu.memory_space<vmem>>, vector<1x128x128xbf16>
    %11 = vector.shape_cast %10 : vector<1x128x128xbf16> to vector<128x128xbf16>
    %c1_17 = arith.constant 1 : index
    %c0_18 = arith.constant 0 : index
    %c0_19 = arith.constant 0 : index
    %12 = vector.load %arg5[%c1_17, %c0_18, %c0_19] : memref<2x128x128xbf16, #tpu.memory_space<vmem>>, vector<1x128x128xbf16>
    %13 = vector.shape_cast %12 : vector<1x128x128xbf16> to vector<128x128xbf16>
    %c0_20 = arith.constant 0 : index
    %c0_21 = arith.constant 0 : index
    %c0_22 = arith.constant 0 : index
    %14 = vector.load %arg6[%c0_20, %c0_21, %c0_22] : memref<2x128x256xbf16, #tpu.memory_space<vmem>>, vector<1x128x256xbf16>
    %15 = vector.shape_cast %14 : vector<1x128x256xbf16> to vector<128x256xbf16>
    %c1_23 = arith.constant 1 : index
    %c0_24 = arith.constant 0 : index
    %c0_25 = arith.constant 0 : index
    %16 = vector.load %arg6[%c1_23, %c0_24, %c0_25] : memref<2x128x256xbf16, #tpu.memory_space<vmem>>, vector<1x128x256xbf16>
    %17 = vector.shape_cast %16 : vector<1x128x256xbf16> to vector<128x256xbf16>
    %c0_26 = arith.constant 0 : index
    %c0_27 = arith.constant 0 : index
    %c0_28 = arith.constant 0 : index
    %18 = vector.load %arg7[%c0_26, %c0_27, %c0_28] : memref<2x256x128xbf16, #tpu.memory_space<vmem>>, vector<1x256x128xbf16>
    %19 = vector.shape_cast %18 : vector<1x256x128xbf16> to vector<256x128xbf16>
    %c1_29 = arith.constant 1 : index
    %c0_30 = arith.constant 0 : index
    %c0_31 = arith.constant 0 : index
    %20 = vector.load %arg7[%c1_29, %c0_30, %c0_31] : memref<2x256x128xbf16, #tpu.memory_space<vmem>>, vector<1x256x128xbf16>
    %21 = vector.shape_cast %20 : vector<1x256x128xbf16> to vector<256x128xbf16>
    %c2 = arith.constant 2 : index
    %c0_32 = arith.constant 0 : index
    %22 = vector.load %arg3[%c2, %c0_32] : memref<20x384xf32, #tpu.memory_space<vmem>>, vector<1x384xf32>
    %c3 = arith.constant 3 : index
    %c0_33 = arith.constant 0 : index
    %23 = vector.load %arg3[%c3, %c0_33] : memref<20x384xf32, #tpu.memory_space<vmem>>, vector<1x128xf32>
    %c4 = arith.constant 4 : index
    %c0_34 = arith.constant 0 : index
    %24 = vector.load %arg3[%c4, %c0_34] : memref<20x384xf32, #tpu.memory_space<vmem>>, vector<1x128xf32>
    %c5 = arith.constant 5 : index
    %c0_35 = arith.constant 0 : index
    %25 = vector.load %arg3[%c5, %c0_35] : memref<20x384xf32, #tpu.memory_space<vmem>>, vector<1x128xf32>
    %c6 = arith.constant 6 : index
    %c0_36 = arith.constant 0 : index
    %26 = vector.load %arg3[%c6, %c0_36] : memref<20x384xf32, #tpu.memory_space<vmem>>, vector<1x256xf32>
    %c7 = arith.constant 7 : index
    %c0_37 = arith.constant 0 : index
    %27 = vector.load %arg3[%c7, %c0_37] : memref<20x384xf32, #tpu.memory_space<vmem>>, vector<1x128xf32>
    %c8 = arith.constant 8 : index
    %c0_38 = arith.constant 0 : index
    %28 = vector.load %arg3[%c8, %c0_38] : memref<20x384xf32, #tpu.memory_space<vmem>>, vector<1x128xf32>
    %c9 = arith.constant 9 : index
    %c0_39 = arith.constant 0 : index
    %29 = vector.load %arg3[%c9, %c0_39] : memref<20x384xf32, #tpu.memory_space<vmem>>, vector<1x128xf32>
    %c10 = arith.constant 10 : index
    %c0_40 = arith.constant 0 : index
    %30 = vector.load %arg3[%c10, %c0_40] : memref<20x384xf32, #tpu.memory_space<vmem>>, vector<1x384xf32>
    %c11 = arith.constant 11 : index
    %c0_41 = arith.constant 0 : index
    %31 = vector.load %arg3[%c11, %c0_41] : memref<20x384xf32, #tpu.memory_space<vmem>>, vector<1x128xf32>
    %c12 = arith.constant 12 : index
    %c0_42 = arith.constant 0 : index
    %32 = vector.load %arg3[%c12, %c0_42] : memref<20x384xf32, #tpu.memory_space<vmem>>, vector<1x128xf32>
    %c13 = arith.constant 13 : index
    %c0_43 = arith.constant 0 : index
    %33 = vector.load %arg3[%c13, %c0_43] : memref<20x384xf32, #tpu.memory_space<vmem>>, vector<1x128xf32>
    %c14 = arith.constant 14 : index
    %c0_44 = arith.constant 0 : index
    %34 = vector.load %arg3[%c14, %c0_44] : memref<20x384xf32, #tpu.memory_space<vmem>>, vector<1x256xf32>
    %c15 = arith.constant 15 : index
    %c0_45 = arith.constant 0 : index
    %35 = vector.load %arg3[%c15, %c0_45] : memref<20x384xf32, #tpu.memory_space<vmem>>, vector<1x128xf32>
    %c16 = arith.constant 16 : index
    %c0_46 = arith.constant 0 : index
    %36 = vector.load %arg3[%c16, %c0_46] : memref<20x384xf32, #tpu.memory_space<vmem>>, vector<1x128xf32>
    %c17 = arith.constant 17 : index
    %c0_47 = arith.constant 0 : index
    %37 = vector.load %arg3[%c17, %c0_47] : memref<20x384xf32, #tpu.memory_space<vmem>>, vector<1x128xf32>
    %c0_48 = arith.constant 0 : index
    %c0_49 = arith.constant 0 : index
    %38 = vector.load %arg0[%c0_48, %c0_49] : memref<32x128xf32, #tpu.memory_space<vmem>>, vector<32x128xf32>
    %c0_50 = arith.constant 0 : index
    %c0_51 = arith.constant 0 : index
    %39 = vector.load %arg1[%c0_50, %c0_51] : memref<32x32xf32, #tpu.memory_space<vmem>>, vector<32x32xf32>
    %c0_52 = arith.constant 0 : index
    %c0_53 = arith.constant 0 : index
    %40 = vector.load %arg2[%c0_52, %c0_53] : memref<2x128xf32, #tpu.memory_space<vmem>>, vector<2x128xf32>
    %cst = arith.constant dense<0.000000e+00> : vector<32xf32>
    %41 = vector.multi_reduction <add>, %38, %cst [1] : vector<32x128xf32> to vector<32xf32>
    %42 = vector.shape_cast %41 : vector<32xf32> to vector<32x1xf32>
    %cst_54 = arith.constant 1.280000e+02 : f32
    %43 = vector.broadcast %cst_54 : f32 to vector<32x1xf32>
    %44 = arith.divf %42, %43 : vector<32x1xf32>
    %45 = vector.broadcast %44 : vector<32x1xf32> to vector<32x128xf32>
    %46 = arith.subf %38, %45 : vector<32x128xf32>
    %47 = arith.mulf %46, %46 : vector<32x128xf32>
    %cst_55 = arith.constant dense<0.000000e+00> : vector<32xf32>
    %48 = vector.multi_reduction <add>, %47, %cst_55 [1] : vector<32x128xf32> to vector<32xf32>
    %49 = vector.shape_cast %48 : vector<32xf32> to vector<32x1xf32>
    %cst_56 = arith.constant 1.280000e+02 : f32
    %50 = vector.broadcast %cst_56 : f32 to vector<32x1xf32>
    %51 = arith.divf %49, %50 : vector<32x1xf32>
    %52 = vector.broadcast %44 : vector<32x1xf32> to vector<32x128xf32>
    %53 = arith.subf %38, %52 : vector<32x128xf32>
    %cst_57 = arith.constant 9.99999996E-13 : f32
    %54 = vector.broadcast %cst_57 : f32 to vector<32x1xf32>
    %55 = arith.addf %51, %54 : vector<32x1xf32>
    %56 = math.rsqrt %55 : vector<32x1xf32>
    %57 = vector.broadcast %56 : vector<32x1xf32> to vector<32x128xf32>
    %58 = arith.mulf %53, %57 : vector<32x128xf32>
    %59 = vector.broadcast %0 : vector<1x128xf32> to vector<32x128xf32>
    %60 = arith.mulf %58, %59 : vector<32x128xf32>
    %61 = vector.broadcast %1 : vector<1x128xf32> to vector<32x128xf32>
    %62 = arith.addf %60, %61 : vector<32x128xf32>
    %63 = arith.truncf %62 : vector<32x128xf32> to vector<32x128xbf16>
    %cst_58 = arith.constant dense<0.000000e+00> : vector<32x384xf32>
    %64 = tpu.matmul %63, %7, %cst_58 {dimension_numbers = #tpu.dot_dimension_numbers<[1], [0], [0], [1], [0, 0, 1, 1], [], []>} : vector<32x128xbf16>, vector<128x384xbf16>, vector<32x384xf32> -> vector<32x384xf32>
    %65 = vector.broadcast %22 : vector<1x384xf32> to vector<32x384xf32>
    %66 = arith.addf %64, %65 : vector<32x384xf32>
    %67 = arith.truncf %66 : vector<32x384xf32> to vector<32x384xbf16>
    %68 = vector.extract_strided_slice %67 {offsets = [0, 0], sizes = [32, 128], strides = [1, 1]} : vector<32x384xbf16> to vector<32x128xbf16>
    %69 = vector.extract_strided_slice %67 {offsets = [0, 128], sizes = [32, 128], strides = [1, 1]} : vector<32x384xbf16> to vector<32x128xbf16>
    %70 = vector.extract_strided_slice %67 {offsets = [0, 256], sizes = [32, 128], strides = [1, 1]} : vector<32x384xbf16> to vector<32x128xbf16>
    %71 = vector.extract_strided_slice %68 {offsets = [0, 0], sizes = [32, 64], strides = [1, 1]} : vector<32x128xbf16> to vector<32x64xbf16>
    %72 = vector.extract_strided_slice %69 {offsets = [0, 0], sizes = [32, 64], strides = [1, 1]} : vector<32x128xbf16> to vector<32x64xbf16>
    %73 = vector.extract_strided_slice %70 {offsets = [0, 0], sizes = [32, 64], strides = [1, 1]} : vector<32x128xbf16> to vector<32x64xbf16>
    %cst_59 = arith.constant dense<0.000000e+00> : vector<32x32xf32>
    %74 = tpu.matmul %71, %72, %cst_59 {dimension_numbers = #tpu.dot_dimension_numbers<[1], [1], [0], [0], [0, 0, 1, 0], [], []>} : vector<32x64xbf16>, vector<32x64xbf16>, vector<32x32xf32> -> vector<32x32xf32>
    %cst_60 = arith.constant 1.250000e-01 : f32
    %75 = vector.broadcast %cst_60 : f32 to vector<32x32xf32>
    %76 = arith.mulf %74, %75 : vector<32x32xf32>
    %77 = arith.addf %76, %39 : vector<32x32xf32>
    %cst_61 = arith.constant dense<0xFF800000> : vector<32xf32>
    %78 = vector.multi_reduction <maximumf>, %77, %cst_61 [1] : vector<32x32xf32> to vector<32xf32>
    %79 = vector.shape_cast %78 : vector<32xf32> to vector<32x1xf32>
    %80 = vector.broadcast %79 : vector<32x1xf32> to vector<32x32xf32>
    %81 = arith.subf %77, %80 : vector<32x32xf32>
    %82 = math.exp %81 : vector<32x32xf32>
    %cst_62 = arith.constant dense<0.000000e+00> : vector<32xf32>
    %83 = vector.multi_reduction <add>, %82, %cst_62 [1] : vector<32x32xf32> to vector<32xf32>
    %84 = vector.shape_cast %83 : vector<32xf32> to vector<32x1xf32>
    %85 = vector.broadcast %84 : vector<32x1xf32> to vector<32x32xf32>
    %86 = arith.divf %82, %85 : vector<32x32xf32>
    %87 = arith.truncf %86 : vector<32x32xf32> to vector<32x32xbf16>
    %cst_63 = arith.constant dense<0.000000e+00> : vector<32x64xf32>
    %88 = tpu.matmul %87, %73, %cst_63 {dimension_numbers = #tpu.dot_dimension_numbers<[1], [0], [0], [1], [0, 0, 1, 1], [], []>} : vector<32x32xbf16>, vector<32x64xbf16>, vector<32x64xf32> -> vector<32x64xf32>
    %89 = arith.truncf %88 : vector<32x64xf32> to vector<32x64xbf16>
    %90 = vector.extract_strided_slice %11 {offsets = [0, 0], sizes = [64, 128], strides = [1, 1]} : vector<128x128xbf16> to vector<64x128xbf16>
    %cst_64 = arith.constant dense<0.000000e+00> : vector<32x128xf32>
    %91 = tpu.matmul %89, %90, %cst_64 {dimension_numbers = #tpu.dot_dimension_numbers<[1], [0], [0], [1], [0, 0, 1, 1], [], []>} : vector<32x64xbf16>, vector<64x128xbf16>, vector<32x128xf32> -> vector<32x128xf32>
    %92 = vector.extract_strided_slice %68 {offsets = [0, 64], sizes = [32, 64], strides = [1, 1]} : vector<32x128xbf16> to vector<32x64xbf16>
    %93 = vector.extract_strided_slice %69 {offsets = [0, 64], sizes = [32, 64], strides = [1, 1]} : vector<32x128xbf16> to vector<32x64xbf16>
    %94 = vector.extract_strided_slice %70 {offsets = [0, 64], sizes = [32, 64], strides = [1, 1]} : vector<32x128xbf16> to vector<32x64xbf16>
    %cst_65 = arith.constant dense<0.000000e+00> : vector<32x32xf32>
    %95 = tpu.matmul %92, %93, %cst_65 {dimension_numbers = #tpu.dot_dimension_numbers<[1], [1], [0], [0], [0, 0, 1, 0], [], []>} : vector<32x64xbf16>, vector<32x64xbf16>, vector<32x32xf32> -> vector<32x32xf32>
    %cst_66 = arith.constant 1.250000e-01 : f32
    %96 = vector.broadcast %cst_66 : f32 to vector<32x32xf32>
    %97 = arith.mulf %95, %96 : vector<32x32xf32>
    %98 = arith.addf %97, %39 : vector<32x32xf32>
    %cst_67 = arith.constant dense<0xFF800000> : vector<32xf32>
    %99 = vector.multi_reduction <maximumf>, %98, %cst_67 [1] : vector<32x32xf32> to vector<32xf32>
    %100 = vector.shape_cast %99 : vector<32xf32> to vector<32x1xf32>
    %101 = vector.broadcast %100 : vector<32x1xf32> to vector<32x32xf32>
    %102 = arith.subf %98, %101 : vector<32x32xf32>
    %103 = math.exp %102 : vector<32x32xf32>
    %cst_68 = arith.constant dense<0.000000e+00> : vector<32xf32>
    %104 = vector.multi_reduction <add>, %103, %cst_68 [1] : vector<32x32xf32> to vector<32xf32>
    %105 = vector.shape_cast %104 : vector<32xf32> to vector<32x1xf32>
    %106 = vector.broadcast %105 : vector<32x1xf32> to vector<32x32xf32>
    %107 = arith.divf %103, %106 : vector<32x32xf32>
    %108 = arith.truncf %107 : vector<32x32xf32> to vector<32x32xbf16>
    %cst_69 = arith.constant dense<0.000000e+00> : vector<32x64xf32>
    %109 = tpu.matmul %108, %94, %cst_69 {dimension_numbers = #tpu.dot_dimension_numbers<[1], [0], [0], [1], [0, 0, 1, 1], [], []>} : vector<32x32xbf16>, vector<32x64xbf16>, vector<32x64xf32> -> vector<32x64xf32>
    %110 = arith.truncf %109 : vector<32x64xf32> to vector<32x64xbf16>
    %111 = vector.extract_strided_slice %11 {offsets = [64, 0], sizes = [64, 128], strides = [1, 1]} : vector<128x128xbf16> to vector<64x128xbf16>
    %cst_70 = arith.constant dense<0.000000e+00> : vector<32x128xf32>
    %112 = tpu.matmul %110, %111, %cst_70 {dimension_numbers = #tpu.dot_dimension_numbers<[1], [0], [0], [1], [0, 0, 1, 1], [], []>} : vector<32x64xbf16>, vector<64x128xbf16>, vector<32x128xf32> -> vector<32x128xf32>
    %113 = arith.addf %91, %112 : vector<32x128xf32>
    %114 = arith.addf %62, %113 : vector<32x128xf32>
    %115 = vector.broadcast %23 : vector<1x128xf32> to vector<32x128xf32>
    %116 = arith.addf %114, %115 : vector<32x128xf32>
    %cst_71 = arith.constant dense<0.000000e+00> : vector<32xf32>
    %117 = vector.multi_reduction <add>, %116, %cst_71 [1] : vector<32x128xf32> to vector<32xf32>
    %118 = vector.shape_cast %117 : vector<32xf32> to vector<32x1xf32>
    %cst_72 = arith.constant 1.280000e+02 : f32
    %119 = vector.broadcast %cst_72 : f32 to vector<32x1xf32>
    %120 = arith.divf %118, %119 : vector<32x1xf32>
    %121 = vector.broadcast %120 : vector<32x1xf32> to vector<32x128xf32>
    %122 = arith.subf %116, %121 : vector<32x128xf32>
    %123 = arith.mulf %122, %122 : vector<32x128xf32>
    %cst_73 = arith.constant dense<0.000000e+00> : vector<32xf32>
    %124 = vector.multi_reduction <add>, %123, %cst_73 [1] : vector<32x128xf32> to vector<32xf32>
    %125 = vector.shape_cast %124 : vector<32xf32> to vector<32x1xf32>
    %cst_74 = arith.constant 1.280000e+02 : f32
    %126 = vector.broadcast %cst_74 : f32 to vector<32x1xf32>
    %127 = arith.divf %125, %126 : vector<32x1xf32>
    %128 = vector.broadcast %120 : vector<32x1xf32> to vector<32x128xf32>
    %129 = arith.subf %116, %128 : vector<32x128xf32>
    %cst_75 = arith.constant 9.99999996E-13 : f32
    %130 = vector.broadcast %cst_75 : f32 to vector<32x1xf32>
    %131 = arith.addf %127, %130 : vector<32x1xf32>
    %132 = math.rsqrt %131 : vector<32x1xf32>
    %133 = vector.broadcast %132 : vector<32x1xf32> to vector<32x128xf32>
    %134 = arith.mulf %129, %133 : vector<32x128xf32>
    %135 = vector.broadcast %24 : vector<1x128xf32> to vector<32x128xf32>
    %136 = arith.mulf %134, %135 : vector<32x128xf32>
    %137 = vector.broadcast %25 : vector<1x128xf32> to vector<32x128xf32>
    %138 = arith.addf %136, %137 : vector<32x128xf32>
    %139 = arith.truncf %138 : vector<32x128xf32> to vector<32x128xbf16>
    %cst_76 = arith.constant dense<0.000000e+00> : vector<32x256xf32>
    %140 = tpu.matmul %139, %15, %cst_76 {dimension_numbers = #tpu.dot_dimension_numbers<[1], [0], [0], [1], [0, 0, 1, 1], [], []>} : vector<32x128xbf16>, vector<128x256xbf16>, vector<32x256xf32> -> vector<32x256xf32>
    %141 = vector.broadcast %26 : vector<1x256xf32> to vector<32x256xf32>
    %142 = arith.addf %140, %141 : vector<32x256xf32>
    %cst_77 = arith.constant 5.000000e-01 : f32
    %143 = vector.broadcast %cst_77 : f32 to vector<32x256xf32>
    %144 = arith.mulf %143, %142 : vector<32x256xf32>
    %cst_78 = arith.constant 4.471500e-02 : f32
    %145 = vector.broadcast %cst_78 : f32 to vector<32x256xf32>
    %146 = arith.mulf %145, %142 : vector<32x256xf32>
    %147 = arith.mulf %146, %142 : vector<32x256xf32>
    %148 = arith.mulf %147, %142 : vector<32x256xf32>
    %149 = arith.addf %142, %148 : vector<32x256xf32>
    %cst_79 = arith.constant 0.797884583 : f32
    %150 = vector.broadcast %cst_79 : f32 to vector<32x256xf32>
    %151 = arith.mulf %150, %149 : vector<32x256xf32>
    %152 = math.tanh %151 : vector<32x256xf32>
    %cst_80 = arith.constant 1.000000e+00 : f32
    %153 = vector.broadcast %cst_80 : f32 to vector<32x256xf32>
    %154 = arith.addf %153, %152 : vector<32x256xf32>
    %155 = arith.mulf %144, %154 : vector<32x256xf32>
    %156 = arith.truncf %155 : vector<32x256xf32> to vector<32x256xbf16>
    %cst_81 = arith.constant dense<0.000000e+00> : vector<32x128xf32>
    %157 = tpu.matmul %156, %19, %cst_81 {dimension_numbers = #tpu.dot_dimension_numbers<[1], [0], [0], [1], [0, 0, 1, 1], [], []>} : vector<32x256xbf16>, vector<256x128xbf16>, vector<32x128xf32> -> vector<32x128xf32>
    %158 = vector.broadcast %27 : vector<1x128xf32> to vector<32x128xf32>
    %159 = arith.addf %157, %158 : vector<32x128xf32>
    %160 = arith.addf %138, %159 : vector<32x128xf32>
    %cst_82 = arith.constant dense<0.000000e+00> : vector<32xf32>
    %161 = vector.multi_reduction <add>, %160, %cst_82 [1] : vector<32x128xf32> to vector<32xf32>
    %162 = vector.shape_cast %161 : vector<32xf32> to vector<32x1xf32>
    %cst_83 = arith.constant 1.280000e+02 : f32
    %163 = vector.broadcast %cst_83 : f32 to vector<32x1xf32>
    %164 = arith.divf %162, %163 : vector<32x1xf32>
    %165 = vector.broadcast %164 : vector<32x1xf32> to vector<32x128xf32>
    %166 = arith.subf %160, %165 : vector<32x128xf32>
    %167 = arith.mulf %166, %166 : vector<32x128xf32>
    %cst_84 = arith.constant dense<0.000000e+00> : vector<32xf32>
    %168 = vector.multi_reduction <add>, %167, %cst_84 [1] : vector<32x128xf32> to vector<32xf32>
    %169 = vector.shape_cast %168 : vector<32xf32> to vector<32x1xf32>
    %cst_85 = arith.constant 1.280000e+02 : f32
    %170 = vector.broadcast %cst_85 : f32 to vector<32x1xf32>
    %171 = arith.divf %169, %170 : vector<32x1xf32>
    %172 = vector.broadcast %164 : vector<32x1xf32> to vector<32x128xf32>
    %173 = arith.subf %160, %172 : vector<32x128xf32>
    %cst_86 = arith.constant 9.99999996E-13 : f32
    %174 = vector.broadcast %cst_86 : f32 to vector<32x1xf32>
    %175 = arith.addf %171, %174 : vector<32x1xf32>
    %176 = math.rsqrt %175 : vector<32x1xf32>
    %177 = vector.broadcast %176 : vector<32x1xf32> to vector<32x128xf32>
    %178 = arith.mulf %173, %177 : vector<32x128xf32>
    %179 = vector.broadcast %28 : vector<1x128xf32> to vector<32x128xf32>
    %180 = arith.mulf %178, %179 : vector<32x128xf32>
    %181 = vector.broadcast %29 : vector<1x128xf32> to vector<32x128xf32>
    %182 = arith.addf %180, %181 : vector<32x128xf32>
    %183 = arith.truncf %182 : vector<32x128xf32> to vector<32x128xbf16>
    %cst_87 = arith.constant dense<0.000000e+00> : vector<32x384xf32>
    %184 = tpu.matmul %183, %9, %cst_87 {dimension_numbers = #tpu.dot_dimension_numbers<[1], [0], [0], [1], [0, 0, 1, 1], [], []>} : vector<32x128xbf16>, vector<128x384xbf16>, vector<32x384xf32> -> vector<32x384xf32>
    %185 = vector.broadcast %30 : vector<1x384xf32> to vector<32x384xf32>
    %186 = arith.addf %184, %185 : vector<32x384xf32>
    %187 = arith.truncf %186 : vector<32x384xf32> to vector<32x384xbf16>
    %188 = vector.extract_strided_slice %187 {offsets = [0, 0], sizes = [32, 128], strides = [1, 1]} : vector<32x384xbf16> to vector<32x128xbf16>
    %189 = vector.extract_strided_slice %187 {offsets = [0, 128], sizes = [32, 128], strides = [1, 1]} : vector<32x384xbf16> to vector<32x128xbf16>
    %190 = vector.extract_strided_slice %187 {offsets = [0, 256], sizes = [32, 128], strides = [1, 1]} : vector<32x384xbf16> to vector<32x128xbf16>
    %191 = vector.extract_strided_slice %188 {offsets = [0, 0], sizes = [32, 64], strides = [1, 1]} : vector<32x128xbf16> to vector<32x64xbf16>
    %192 = vector.extract_strided_slice %189 {offsets = [0, 0], sizes = [32, 64], strides = [1, 1]} : vector<32x128xbf16> to vector<32x64xbf16>
    %193 = vector.extract_strided_slice %190 {offsets = [0, 0], sizes = [32, 64], strides = [1, 1]} : vector<32x128xbf16> to vector<32x64xbf16>
    %cst_88 = arith.constant dense<0.000000e+00> : vector<32x32xf32>
    %194 = tpu.matmul %191, %192, %cst_88 {dimension_numbers = #tpu.dot_dimension_numbers<[1], [1], [0], [0], [0, 0, 1, 0], [], []>} : vector<32x64xbf16>, vector<32x64xbf16>, vector<32x32xf32> -> vector<32x32xf32>
    %cst_89 = arith.constant 1.250000e-01 : f32
    %195 = vector.broadcast %cst_89 : f32 to vector<32x32xf32>
    %196 = arith.mulf %194, %195 : vector<32x32xf32>
    %197 = arith.addf %196, %39 : vector<32x32xf32>
    %cst_90 = arith.constant dense<0xFF800000> : vector<32xf32>
    %198 = vector.multi_reduction <maximumf>, %197, %cst_90 [1] : vector<32x32xf32> to vector<32xf32>
    %199 = vector.shape_cast %198 : vector<32xf32> to vector<32x1xf32>
    %200 = vector.broadcast %199 : vector<32x1xf32> to vector<32x32xf32>
    %201 = arith.subf %197, %200 : vector<32x32xf32>
    %202 = math.exp %201 : vector<32x32xf32>
    %cst_91 = arith.constant dense<0.000000e+00> : vector<32xf32>
    %203 = vector.multi_reduction <add>, %202, %cst_91 [1] : vector<32x32xf32> to vector<32xf32>
    %204 = vector.shape_cast %203 : vector<32xf32> to vector<32x1xf32>
    %205 = vector.broadcast %204 : vector<32x1xf32> to vector<32x32xf32>
    %206 = arith.divf %202, %205 : vector<32x32xf32>
    %207 = arith.truncf %206 : vector<32x32xf32> to vector<32x32xbf16>
    %cst_92 = arith.constant dense<0.000000e+00> : vector<32x64xf32>
    %208 = tpu.matmul %207, %193, %cst_92 {dimension_numbers = #tpu.dot_dimension_numbers<[1], [0], [0], [1], [0, 0, 1, 1], [], []>} : vector<32x32xbf16>, vector<32x64xbf16>, vector<32x64xf32> -> vector<32x64xf32>
    %209 = arith.truncf %208 : vector<32x64xf32> to vector<32x64xbf16>
    %210 = vector.extract_strided_slice %13 {offsets = [0, 0], sizes = [64, 128], strides = [1, 1]} : vector<128x128xbf16> to vector<64x128xbf16>
    %cst_93 = arith.constant dense<0.000000e+00> : vector<32x128xf32>
    %211 = tpu.matmul %209, %210, %cst_93 {dimension_numbers = #tpu.dot_dimension_numbers<[1], [0], [0], [1], [0, 0, 1, 1], [], []>} : vector<32x64xbf16>, vector<64x128xbf16>, vector<32x128xf32> -> vector<32x128xf32>
    %212 = vector.extract_strided_slice %188 {offsets = [0, 64], sizes = [32, 64], strides = [1, 1]} : vector<32x128xbf16> to vector<32x64xbf16>
    %213 = vector.extract_strided_slice %189 {offsets = [0, 64], sizes = [32, 64], strides = [1, 1]} : vector<32x128xbf16> to vector<32x64xbf16>
    %214 = vector.extract_strided_slice %190 {offsets = [0, 64], sizes = [32, 64], strides = [1, 1]} : vector<32x128xbf16> to vector<32x64xbf16>
    %cst_94 = arith.constant dense<0.000000e+00> : vector<32x32xf32>
    %215 = tpu.matmul %212, %213, %cst_94 {dimension_numbers = #tpu.dot_dimension_numbers<[1], [1], [0], [0], [0, 0, 1, 0], [], []>} : vector<32x64xbf16>, vector<32x64xbf16>, vector<32x32xf32> -> vector<32x32xf32>
    %cst_95 = arith.constant 1.250000e-01 : f32
    %216 = vector.broadcast %cst_95 : f32 to vector<32x32xf32>
    %217 = arith.mulf %215, %216 : vector<32x32xf32>
    %218 = arith.addf %217, %39 : vector<32x32xf32>
    %cst_96 = arith.constant dense<0xFF800000> : vector<32xf32>
    %219 = vector.multi_reduction <maximumf>, %218, %cst_96 [1] : vector<32x32xf32> to vector<32xf32>
    %220 = vector.shape_cast %219 : vector<32xf32> to vector<32x1xf32>
    %221 = vector.broadcast %220 : vector<32x1xf32> to vector<32x32xf32>
    %222 = arith.subf %218, %221 : vector<32x32xf32>
    %223 = math.exp %222 : vector<32x32xf32>
    %cst_97 = arith.constant dense<0.000000e+00> : vector<32xf32>
    %224 = vector.multi_reduction <add>, %223, %cst_97 [1] : vector<32x32xf32> to vector<32xf32>
    %225 = vector.shape_cast %224 : vector<32xf32> to vector<32x1xf32>
    %226 = vector.broadcast %225 : vector<32x1xf32> to vector<32x32xf32>
    %227 = arith.divf %223, %226 : vector<32x32xf32>
    %228 = arith.truncf %227 : vector<32x32xf32> to vector<32x32xbf16>
    %cst_98 = arith.constant dense<0.000000e+00> : vector<32x64xf32>
    %229 = tpu.matmul %228, %214, %cst_98 {dimension_numbers = #tpu.dot_dimension_numbers<[1], [0], [0], [1], [0, 0, 1, 1], [], []>} : vector<32x32xbf16>, vector<32x64xbf16>, vector<32x64xf32> -> vector<32x64xf32>
    %230 = arith.truncf %229 : vector<32x64xf32> to vector<32x64xbf16>
    %231 = vector.extract_strided_slice %13 {offsets = [64, 0], sizes = [64, 128], strides = [1, 1]} : vector<128x128xbf16> to vector<64x128xbf16>
    %cst_99 = arith.constant dense<0.000000e+00> : vector<32x128xf32>
    %232 = tpu.matmul %230, %231, %cst_99 {dimension_numbers = #tpu.dot_dimension_numbers<[1], [0], [0], [1], [0, 0, 1, 1], [], []>} : vector<32x64xbf16>, vector<64x128xbf16>, vector<32x128xf32> -> vector<32x128xf32>
    %233 = arith.addf %211, %232 : vector<32x128xf32>
    %234 = arith.addf %182, %233 : vector<32x128xf32>
    %235 = vector.broadcast %31 : vector<1x128xf32> to vector<32x128xf32>
    %236 = arith.addf %234, %235 : vector<32x128xf32>
    %cst_100 = arith.constant dense<0.000000e+00> : vector<32xf32>
    %237 = vector.multi_reduction <add>, %236, %cst_100 [1] : vector<32x128xf32> to vector<32xf32>
    %238 = vector.shape_cast %237 : vector<32xf32> to vector<32x1xf32>
    %cst_101 = arith.constant 1.280000e+02 : f32
    %239 = vector.broadcast %cst_101 : f32 to vector<32x1xf32>
    %240 = arith.divf %238, %239 : vector<32x1xf32>
    %241 = vector.broadcast %240 : vector<32x1xf32> to vector<32x128xf32>
    %242 = arith.subf %236, %241 : vector<32x128xf32>
    %243 = arith.mulf %242, %242 : vector<32x128xf32>
    %cst_102 = arith.constant dense<0.000000e+00> : vector<32xf32>
    %244 = vector.multi_reduction <add>, %243, %cst_102 [1] : vector<32x128xf32> to vector<32xf32>
    %245 = vector.shape_cast %244 : vector<32xf32> to vector<32x1xf32>
    %cst_103 = arith.constant 1.280000e+02 : f32
    %246 = vector.broadcast %cst_103 : f32 to vector<32x1xf32>
    %247 = arith.divf %245, %246 : vector<32x1xf32>
    %248 = vector.broadcast %240 : vector<32x1xf32> to vector<32x128xf32>
    %249 = arith.subf %236, %248 : vector<32x128xf32>
    %cst_104 = arith.constant 9.99999996E-13 : f32
    %250 = vector.broadcast %cst_104 : f32 to vector<32x1xf32>
    %251 = arith.addf %247, %250 : vector<32x1xf32>
    %252 = math.rsqrt %251 : vector<32x1xf32>
    %253 = vector.broadcast %252 : vector<32x1xf32> to vector<32x128xf32>
    %254 = arith.mulf %249, %253 : vector<32x128xf32>
    %255 = vector.broadcast %32 : vector<1x128xf32> to vector<32x128xf32>
    %256 = arith.mulf %254, %255 : vector<32x128xf32>
    %257 = vector.broadcast %33 : vector<1x128xf32> to vector<32x128xf32>
    %258 = arith.addf %256, %257 : vector<32x128xf32>
    %259 = vector.extract_strided_slice %258 {offsets = [0, 0], sizes = [1, 128], strides = [1, 1]} : vector<32x128xf32> to vector<1x128xf32>
    %260 = vector.extract_strided_slice %258 {offsets = [16, 0], sizes = [1, 128], strides = [1, 1]} : vector<32x128xf32> to vector<1x128xf32>
    %261 = tpu.concatenate %259, %260 in 0 : vector<1x128xf32>, vector<1x128xf32> -> vector<2x128xf32>
    %262 = arith.truncf %261 : vector<2x128xf32> to vector<2x128xbf16>
    %cst_105 = arith.constant dense<0.000000e+00> : vector<2x256xf32>
    %263 = tpu.matmul %262, %17, %cst_105 {dimension_numbers = #tpu.dot_dimension_numbers<[1], [0], [0], [1], [0, 0, 1, 1], [], []>} : vector<2x128xbf16>, vector<128x256xbf16>, vector<2x256xf32> -> vector<2x256xf32>
    %264 = vector.broadcast %34 : vector<1x256xf32> to vector<2x256xf32>
    %265 = arith.addf %263, %264 : vector<2x256xf32>
    %cst_106 = arith.constant 5.000000e-01 : f32
    %266 = vector.broadcast %cst_106 : f32 to vector<2x256xf32>
    %267 = arith.mulf %266, %265 : vector<2x256xf32>
    %cst_107 = arith.constant 4.471500e-02 : f32
    %268 = vector.broadcast %cst_107 : f32 to vector<2x256xf32>
    %269 = arith.mulf %268, %265 : vector<2x256xf32>
    %270 = arith.mulf %269, %265 : vector<2x256xf32>
    %271 = arith.mulf %270, %265 : vector<2x256xf32>
    %272 = arith.addf %265, %271 : vector<2x256xf32>
    %cst_108 = arith.constant 0.797884583 : f32
    %273 = vector.broadcast %cst_108 : f32 to vector<2x256xf32>
    %274 = arith.mulf %273, %272 : vector<2x256xf32>
    %275 = math.tanh %274 : vector<2x256xf32>
    %cst_109 = arith.constant 1.000000e+00 : f32
    %276 = vector.broadcast %cst_109 : f32 to vector<2x256xf32>
    %277 = arith.addf %276, %275 : vector<2x256xf32>
    %278 = arith.mulf %267, %277 : vector<2x256xf32>
    %279 = arith.truncf %278 : vector<2x256xf32> to vector<2x256xbf16>
    %cst_110 = arith.constant dense<0.000000e+00> : vector<2x128xf32>
    %280 = tpu.matmul %279, %21, %cst_110 {dimension_numbers = #tpu.dot_dimension_numbers<[1], [0], [0], [1], [0, 0, 1, 1], [], []>} : vector<2x256xbf16>, vector<256x128xbf16>, vector<2x128xf32> -> vector<2x128xf32>
    %281 = vector.broadcast %35 : vector<1x128xf32> to vector<2x128xf32>
    %282 = arith.addf %280, %281 : vector<2x128xf32>
    %283 = arith.addf %261, %282 : vector<2x128xf32>
    %cst_111 = arith.constant dense<0.000000e+00> : vector<2xf32>
    %284 = vector.multi_reduction <add>, %283, %cst_111 [1] : vector<2x128xf32> to vector<2xf32>
    %285 = vector.shape_cast %284 : vector<2xf32> to vector<2x1xf32>
    %cst_112 = arith.constant 1.280000e+02 : f32
    %286 = vector.broadcast %cst_112 : f32 to vector<2x1xf32>
    %287 = arith.divf %285, %286 : vector<2x1xf32>
    %288 = vector.broadcast %287 : vector<2x1xf32> to vector<2x128xf32>
    %289 = arith.subf %283, %288 : vector<2x128xf32>
    %290 = arith.mulf %289, %289 : vector<2x128xf32>
    %cst_113 = arith.constant dense<0.000000e+00> : vector<2xf32>
    %291 = vector.multi_reduction <add>, %290, %cst_113 [1] : vector<2x128xf32> to vector<2xf32>
    %292 = vector.shape_cast %291 : vector<2xf32> to vector<2x1xf32>
    %cst_114 = arith.constant 1.280000e+02 : f32
    %293 = vector.broadcast %cst_114 : f32 to vector<2x1xf32>
    %294 = arith.divf %292, %293 : vector<2x1xf32>
    %295 = vector.broadcast %287 : vector<2x1xf32> to vector<2x128xf32>
    %296 = arith.subf %283, %295 : vector<2x128xf32>
    %cst_115 = arith.constant 9.99999996E-13 : f32
    %297 = vector.broadcast %cst_115 : f32 to vector<2x1xf32>
    %298 = arith.addf %294, %297 : vector<2x1xf32>
    %299 = math.rsqrt %298 : vector<2x1xf32>
    %300 = vector.broadcast %299 : vector<2x1xf32> to vector<2x128xf32>
    %301 = arith.mulf %296, %300 : vector<2x128xf32>
    %302 = vector.broadcast %36 : vector<1x128xf32> to vector<2x128xf32>
    %303 = arith.mulf %301, %302 : vector<2x128xf32>
    %304 = vector.broadcast %37 : vector<1x128xf32> to vector<2x128xf32>
    %305 = arith.addf %303, %304 : vector<2x128xf32>
    %306 = arith.truncf %305 : vector<2x128xf32> to vector<2x128xbf16>
    %cst_116 = arith.constant dense<0.000000e+00> : vector<2x128xf32>
    %307 = tpu.matmul %306, %2, %cst_116 {dimension_numbers = #tpu.dot_dimension_numbers<[1], [0], [0], [1], [0, 0, 1, 1], [], []>} : vector<2x128xbf16>, vector<128x128xbf16>, vector<2x128xf32> -> vector<2x128xf32>
    %308 = vector.broadcast %3 : vector<1x128xf32> to vector<2x128xf32>
    %309 = arith.addf %307, %308 : vector<2x128xf32>
    %310 = math.tanh %309 : vector<2x128xf32>
    %311 = arith.mulf %310, %40 : vector<2x128xf32>
    %312 = arith.truncf %311 : vector<2x128xf32> to vector<2x128xbf16>
    %cst_117 = arith.constant dense<0.000000e+00> : vector<2x128xf32>
    %313 = tpu.matmul %312, %4, %cst_117 {dimension_numbers = #tpu.dot_dimension_numbers<[1], [0], [0], [1], [0, 0, 1, 1], [], []>} : vector<2x128xbf16>, vector<128x128xbf16>, vector<2x128xf32> -> vector<2x128xf32>
    %314 = vector.broadcast %5 : vector<1x128xf32> to vector<2x128xf32>
    %315 = arith.addf %313, %314 : vector<2x128xf32>
    %c0_118 = arith.constant 0 : index
    %c0_119 = arith.constant 0 : index
    %316 = vector.load %arg10[%c0_118, %c0_119] : memref<2x128xf32, #tpu.memory_space<vmem>>, vector<2x128xf32>
    tpu.vector_store %arg10[%c0_118, %c0_119], %315 {strides = array<i32>} : memref<2x128xf32, #tpu.memory_space<vmem>>, vector<2x128xf32>,
    return
  }
}

</mosaic_0001>

<bundles_post_ra>
// kernel: tpu_custom_call.1
= control target key start
LH: loop header
LB: loop body
LE: loop exit
PB: predicated region body
PF: predicated region fallthrough
CT: control target
= control target key end

     0   :  { %15 = vsyncpa [#allocation3], 0  ;;  %s4558_s0 = inlined_call_operand.hbm [shape: f32[32,128], index: 0, kind: input, shape index: {}]   ;;  %s4559_s1 = inlined_call_operand.hbm [shape: f32[32,32], index: 1, kind: input, shape index: {}]   ;;  %s4560_s2 = inlined_call_operand.vmem [shape: f32[2,128], index: 2, kind: input, shape index: {}]   ;;  %s4561_s3 = inlined_call_operand.hbm [shape: f32[20,384], index: 3, kind: input, shape index: {}]   ;;  %s4562_s4 = inlined_call_operand.hbm [shape: bf16[2,128,384], index: 4, kind: input, shape index: {}]   ;;  %s4563_s5 = inlined_call_operand.hbm [shape: bf16[2,128,128], index: 5, kind: input, shape index: {}]   ;;  %s4564_s6 = inlined_call_operand.hbm [shape: bf16[2,128,256], index: 6, kind: input, shape index: {}]   ;;  %s4565_s7 = inlined_call_operand.hbm [shape: bf16[2,256,128], index: 7, kind: input, shape index: {}]   ;;  %s4566_s8 = inlined_call_operand.hbm [shape: bf16[128,128], index: 8, kind: input, shape index: {}]   ;;  %s4567_s9 = inlined_call_operand.hbm [shape: bf16[128,128], index: 9, kind: input, shape index: {}]   ;;  %s4568_s10 = inlined_call_operand.hbm [shape: f32[2,128], index: 10, kind: output, shape index: {}]  }
   0x1   :  { %16 = vsyncpa [#allocation6], 0 }
   0x2   :  { %17 = vsyncpa [#allocation9], 0 }
   0x3   :  { %18 = vsyncpa [#allocation12], 0 }
   0x4   :  { %19 = vsyncpa [#allocation15], 0 }
   0x5   :  { %20 = vsyncpa [#allocation4], 0  ;;  %s4088_s13 = smov [#allocation5]   ;;  %s4089_s15 = smov [#allocation8]  }
   0x6   :  { %s38_s14 = sshll.u32 %s4088_s13, 4  ;;  %s64_s16 = sshll.u32 %s4089_s15, 4  ;;  %s39_s14 = int_to_ptr.vmem [resolvable:$true] %s38_s14  ;;  %s65_s16 = int_to_ptr.vmem [resolvable:$true] %s64_s16 }
   0x7   :  { %s3884_s17 = scalar_lea.vmem %s39_s14, 512  ;;  %p3889_p1 = scmp.lt.s32.totalorder %s39_s14, %s39_s14 }
   0x8   :  { %p3885_p0 = scmp.ne.s32.totalorder %s39_s14, %s3884_s17  ;;  %p3890_p2 = scmp.lt.s32.totalorder %s3884_s17, %s3884_s17 }
   0xa   :  { %p3891_p3 = por %p3890_p2, %p3889_p1 }
   0xc   :  { %p3892_p4 = pnand %p3891_p3, %p3885_p0 }
   0xe   :  { %3895 = shalt.err (!%p3892_p4)
}
   0xf   :  { %s4090_s18 = smov 128   ;;  %s4091_s19 = smov 8  }
  0x10   :  { %44 = dma.hbm_to_vmem [thread:$0]  %s4559_s1, 512, %s39_s14, [#allocation6], %s4090_s18, %s4090_s18, %s4091_s19  }
  0x11   :  { %s3904_s22 = scalar_lea.vmem %s65_s16, 6144  ;;  %p3909_p6 = scmp.lt.s32.totalorder %s65_s16, %s65_s16 }
  0x12   :  { %p3905_p5 = scmp.ne.s32.totalorder %s65_s16, %s3904_s22  ;;  %p3910_p7 = scmp.lt.s32.totalorder %s3904_s22, %s3904_s22 }
  0x14   :  { %p3911_p8 = por %p3910_p7, %p3909_p6 }
  0x16   :  { %p3912_p9 = pnand %p3911_p8, %p3905_p5 }
  0x18   :  { %3915 = shalt.err (!%p3912_p9)
}
  0x19   :  { %s4092_s23 = smov 192   ;;  %s4093_s24 = smov 12  }
  0x1a   :  { %70 = dma.hbm_to_vmem [thread:$0]  %s4562_s4, 6144, %s65_s16, [#allocation9], %s4092_s23, %s4092_s23, %s4093_s24  }
  0x1b   :  { %s4094_s27 = smov [#allocation11]  }
  0x1c   :  { %s88_s28 = sshll.u32 %s4094_s27, 4  ;;  %s89_s28 = int_to_ptr.vmem [resolvable:$true] %s88_s28 }
  0x1d   :  { %s3924_s29 = scalar_lea.vmem %s89_s28, 4096  ;;  %p3929_p11 = scmp.lt.s32.totalorder %s89_s28, %s89_s28 }
  0x1e   :  { %p3925_p10 = scmp.ne.s32.totalorder %s89_s28, %s3924_s29  ;;  %p3930_p12 = scmp.lt.s32.totalorder %s3924_s29, %s3924_s29 }
  0x20   :  { %p3931_p13 = por %p3930_p12, %p3929_p11 }
  0x22   :  { %p3932_p0 = pnand %p3931_p13, %p3925_p10 }
  0x24   :  { %3935 = shalt.err (!%p3932_p0)
}
  0x25   :  { %94 = dma.hbm_to_vmem [thread:$0]  %s4564_s6, 4096, %s89_s28, [#allocation12], %s4090_s18, %s4090_s18, %s4091_s19  }
  0x26   :  { %s4095_s11 = smov [#allocation14]   ;;  %s4096_s4 = smov [#allocation2]  }
  0x27   :  { %s112_s12 = sshll.u32 %s4095_s11, 4  ;;  %s26_s13 = sshll.u32 %s4096_s4, 4  ;;  %s113_s12 = int_to_ptr.vmem [resolvable:$true] %s112_s12  ;;  %s27_s13 = int_to_ptr.vmem [resolvable:$true] %s26_s13 }
  0x28   :  { %s3944_s14 = scalar_lea.vmem %s113_s12, 1024  ;;  %p3949_p2 = scmp.lt.s32.totalorder %s113_s12, %s113_s12 }
  0x29   :  { %p3945_p1 = scmp.ne.s32.totalorder %s113_s12, %s3944_s14  ;;  %p3950_p3 = scmp.lt.s32.totalorder %s3944_s14, %s3944_s14 }
  0x2b   :  { %p3951_p4 = por %p3950_p3, %p3949_p2 }
  0x2d   :  { %p3952_p5 = pnand %p3951_p4, %p3945_p1 }
  0x2f   :  { %3955 = shalt.err (!%p3952_p5)
}
  0x30   :  { %s4097_s15 = smov 64   ;;  %s4098_s16 = smov 4  }
  0x31   :  { %118 = dma.hbm_to_vmem [thread:$0]  %s4566_s8, 1024, %s113_s12, [#allocation15], %s4097_s15, %s4097_s15, %s4098_s16  }
  0x32   :  { %s3964_s6 = scalar_lea.vmem %s27_s13, 512  ;;  %p3969_p7 = scmp.lt.s32.totalorder %s27_s13, %s27_s13 }
  0x33   :  { %p3965_p6 = scmp.ne.s32.totalorder %s27_s13, %s3964_s6  ;;  %p3970_p8 = scmp.lt.s32.totalorder %s3964_s6, %s3964_s6 }
  0x35   :  { %p3971_p9 = por %p3970_p8, %p3969_p7 }
  0x37   :  { %p3972_p10 = pnand %p3971_p9, %p3965_p6 }
  0x39   :  { %3975 = shalt.err (!%p3972_p10)
}
  0x3a   :  { %32 = dma.hbm_to_vmem [thread:$0]  %s4558_s0, 512, %s27_s13, [#allocation3], %s4090_s18, %s4090_s18, %s4091_s19  }
  0x3b   :  { %s4099_s23 = smov [#allocation7]  }
  0x3c   :  { %s52_s24 = sshll.u32 %s4099_s23, 4  ;;  %s53_s24 = int_to_ptr.vmem [resolvable:$true] %s52_s24 }
  0x3d   :  { %s3984_s25 = scalar_lea.vmem %s53_s24, 1152  ;;  %p3989_p12 = scmp.lt.s32.totalorder %s53_s24, %s53_s24 }
  0x3e   :  { %p3985_p11 = scmp.ne.s32.totalorder %s53_s24, %s3984_s25  ;;  %p3990_p13 = scmp.lt.s32.totalorder %s3984_s25, %s3984_s25 }
  0x40   :  { %p3991_p0 = por %p3990_p13, %p3989_p12 }
  0x42   :  { %p3992_p1 = pnand %p3991_p0, %p3985_p11 }
  0x44   :  { %3995 = shalt.err (!%p3992_p1)
}
  0x45   :  { %s4100_s8 = smov 384   ;;  %s4101_s26 = smov 24  }
  0x46   :  { %58 = dma.hbm_to_vmem [thread:$0]  %s4561_s3, 1152, %s53_s24, [#allocation6], %s4100_s8, %s4100_s8, %s4101_s26  }
  0x47   :  { %s4102_s29 = smov [#allocation10]   ;;  %s4103_s30 = smov [#allocation13]  }
  0x48   :  { %s76_s1 = sshll.u32 %s4102_s29, 4  ;;  %s100_s0 = sshll.u32 %s4103_s30, 4  ;;  %s77_s1 = int_to_ptr.vmem [resolvable:$true] %s76_s1  ;;  %s101_s0 = int_to_ptr.vmem [resolvable:$true] %s100_s0 }
  0x49   :  { %s4004_s18 = scalar_lea.vmem %s77_s1, 2048  ;;  %p4009_p3 = scmp.lt.s32.totalorder %s77_s1, %s77_s1 }
  0x4a   :  { %p4005_p2 = scmp.ne.s32.totalorder %s77_s1, %s4004_s18  ;;  %p4010_p4 = scmp.lt.s32.totalorder %s4004_s18, %s4004_s18 }
  0x4c   :  { %p4011_p5 = por %p4010_p4, %p4009_p3 }
  0x4e   :  { %p4012_p6 = pnand %p4011_p5, %p4005_p2 }
  0x50   :  { %4015 = shalt.err (!%p4012_p6)
}
  0x51   :  { %82 = dma.hbm_to_vmem [thread:$0]  %s4563_s5, 2048, %s77_s1, [#allocation9], %s4097_s15, %s4097_s15, %s4098_s16  }
  0x52   :  { %s4024_s3 = scalar_lea.vmem %s101_s0, 4096  ;;  %p4029_p8 = scmp.lt.s32.totalorder %s101_s0, %s101_s0 }
  0x53   :  { %p4025_p7 = scmp.ne.s32.totalorder %s101_s0, %s4024_s3  ;;  %p4030_p9 = scmp.lt.s32.totalorder %s4024_s3, %s4024_s3 }
  0x55   :  { %p4031_p10 = por %p4030_p9, %p4029_p8 }
  0x57   :  { %p4032_p11 = pnand %p4031_p10, %p4025_p7 }
  0x59   :  { %4035 = shalt.err (!%p4032_p11)
}
  0x5a   :  { %106 = dma.hbm_to_vmem [thread:$0]  %s4565_s7, 4096, %s101_s0, [#allocation12], %s4097_s15, %s4097_s15, %s4098_s16  }
  0x5b   :  { %s4104_s13 = smov [#allocation16]  }
  0x5c   :  { %s124_s14 = sshll.u32 %s4104_s13, 4  ;;  %s125_s14 = int_to_ptr.vmem [resolvable:$true] %s124_s14 }
  0x5d   :  { %s4044_s17 = scalar_lea.vmem %s125_s14, 1024  ;;  %p4049_p13 = scmp.lt.s32.totalorder %s125_s14, %s125_s14 }
  0x5e   :  { %p4045_p12 = scmp.ne.s32.totalorder %s125_s14, %s4044_s17  ;;  %p4050_p0 = scmp.lt.s32.totalorder %s4044_s17, %s4044_s17 }
  0x60   :  { %p4051_p1 = por %p4050_p0, %p4049_p13 }
  0x62   :  { %p4052_p2 = pnand %p4051_p1, %p4045_p12 }
  0x64   :  { %4055 = shalt.err (!%p4052_p2)
}
  0x65   :  { %130 = dma.hbm_to_vmem [thread:$0]  %s4567_s9, 1024, %s125_s14, [#allocation15], %s4097_s15, %s4097_s15, %s4098_s16  }
  0x66   :  { %4076 = dma.done.wait [#allocation3], 512  }
  0x67   :  { %4077 = vsyncadd [#allocation3], 4294966784 }
  0x68   :  { %4078 = dma.done.wait [#allocation6], 1664  }
  0x69   :  { %4079 = vsyncadd [#allocation6], 4294965632 }
  0x6a   :  { %4080 = dma.done.wait [#allocation9], 8192  }
  0x6b   :  { %4081 = vsyncadd [#allocation9], 4294959104 }
  0x6c   :  { %4082 = dma.done.wait [#allocation12], 8192  }
  0x6d   :  { %4083 = vsyncadd [#allocation12], 4294959104 }
  0x6e   :  { %4084 = dma.done.wait [#allocation15], 2048  }
  0x6f   :  { %4085 = vsyncadd [#allocation15], 4294965248  ;;  %v411_v0 = vld [vmem:[#allocation2] sm:$0xff]  ;;  %v413_v1 = vld [vmem:[#allocation2 + $0x10] sm:$0xff]  ;;  %v4105_v39 = vmov 0   ;;  %vm727_vm0 = vcmask 523264  }
  0x70   :  { %v412_v2 = vld [vmem:[#allocation2 + $0x8] sm:$0xff]  ;;  %420 = vadd.xlane.f32.xlu0 %v411_v0  ;;  %424 = vadd.xlane.f32.xlu1 %v413_v1  ;;  %v414_v3 = vld [vmem:[#allocation2 + $0x18] sm:$0xff]  ;;  %v3580_v4 = vld [vmem:[#allocation8 + $0xac] ss:$12 sps:$4 sm:$0xff]   ;;  %vm797_vm1 = vcmask 261120   ;;  %vm2539_vm2 = vcmask 1040384  }
  0x71   :  { %619 = vmatprep.subr.bf16.mxu0 %v3580_v4  ;;  %v3582_v21 = vld [vmem:[#allocation8 + $0xa8] ss:$12 sps:$4 sm:$0xff]   ;;  %v3585_v23 = vld [vmem:[#allocation8 + $0xb0] ss:$12 sps:$4 sm:$0xff]   ;;  %v3589_v26 = vld [vmem:[#allocation8 + $0x98] ss:$12 sps:$4 sm:$0xff]   ;;  %651 = vmatprep.mubr.bf16.mxu0 %v4105_v39 }
  0x72   :  { %620 = vmatpush1.bf16.msra.mxu0 %v3582_v21  ;;  %v3583_v22 = vld [vmem:[#allocation8 + $0x94] ss:$12 sps:$4 sm:$0xff]   ;;  %3359 = vmatprep.subr.bf16.mxu1 %v3585_v23  ;;  %v3586_v24 = vld [vmem:[#allocation8 + $0x90] ss:$12 sps:$4 sm:$0xff]   ;;  %v3590_v27 = vld [vmem:[#allocation8 + $0x78] ss:$12 sps:$4 sm:$0xff]  }
  0x73   :  { %621 = vmatprep.subr.bf16.mxu0 %v3583_v22  ;;  %3360 = vmatpush3.bf16.msra.mxu1 %v3585_v23  ;;  %v3587_v25 = vld [vmem:[#allocation8 + $0x7c] ss:$12 sps:$4 sm:$0xff]   ;;  %v3591_v28 = vld [vmem:[#allocation8 + $0x64] ss:$12 sps:$4 sm:$0xff]   ;;  %v3593_v29 = vld [vmem:[#allocation8 + $0x80] ss:$12 sps:$4 sm:$0xff]  }
  0x74   :  { %422 = vadd.xlane.f32.xlu0 %v412_v2  ;;  %426 = vadd.xlane.f32.xlu1 %v414_v3  ;;  %v3594_v30 = vld [vmem:[#allocation8 + $0x60] ss:$12 sps:$4 sm:$0xff]   ;;  %v3597_v32 = vld [vmem:[#allocation8 + $0x68] ss:$12 sps:$4 sm:$0xff]   ;;  %v3601_v35 = vld [vmem:[#allocation8 + $0x50] ss:$12 sps:$4 sm:$0xff]  }
  0x75   :  { %3361 = vmatprep.subr.bf16.mxu1 %v3589_v26  ;;  %v3595_v31 = vld [vmem:[#allocation8 + $0x4c] ss:$12 sps:$4 sm:$0xff]   ;;  %v3598_v33 = vld [vmem:[#allocation8 + $0x48] ss:$12 sps:$4 sm:$0xff]   ;;  %v3602_v36 = vld [vmem:[#allocation8 + $0x30] ss:$12 sps:$4 sm:$0xff]  }
  0x76   :  { %622 = vmatpush1.bf16.msra.mxu0 %v3586_v24  ;;  %v3599_v34 = vld [vmem:[#allocation8 + $0x34] ss:$12 sps:$4 sm:$0xff]   ;;  %v3603_v37 = vld [vmem:[#allocation8 + $0x1c] ss:$12 sps:$4 sm:$0xff]   ;;  %v3605_v38 = vld [vmem:[#allocation8 + $0x38] ss:$12 sps:$4 sm:$0xff]  }
  0x77   :  { %623 = vmatprep.subr.bf16.mxu0 %v3587_v25  ;;  %3362 = vmatpush3.bf16.msra.mxu1 %v3589_v26  ;;  %v3606_v40 = vld [vmem:[#allocation8 + $0x18] ss:$12 sps:$4 sm:$0xff]   ;;  %v3609_v42 = vld [vmem:[#allocation8 + $0x20] ss:$12 sps:$4 sm:$0xff]   ;;  %v3611_v44 = vld [vmem:[#allocation8 + $0x8] ss:$12 sps:$4 sm:$0xff]  }
  0x78   :  { %3363 = vmatprep.subr.bf16.mxu1 %v3593_v29  ;;  %v3607_v41 = vld [vmem:[#allocation8 + $0x4] ss:$12 sps:$4 sm:$0xff]   ;;  %v3610_v43 = vld [vmem:[#allocation8] ss:$12 sps:$4 sm:$0xff]   ;;  %v159_v59 = vld [vmem:[#allocation7] ss:$0 sm:$0xff] }
  0x79   :  { %vm2831_vm3 = vcmask 1041408   ;;  %vm4107_vm4 = vmmov 0  }
  0x7a   :  { %624 = vmatpush1.bf16.msra.mxu0 %v3590_v27 }
  0x7b   :  { %625 = vmatprep.subr.bf16.mxu0 %v3591_v28  ;;  %3364 = vmatpush3.bf16.msra.mxu1 %v3593_v29 }
  0x7c   :  { %3365 = vmatprep.subr.bf16.mxu1 %v3597_v32 }
  0x7e   :  { %626 = vmatpush1.bf16.msra.mxu0 %v3594_v30 }
  0x7f   :  { %627 = vmatprep.subr.bf16.mxu0 %v3595_v31  ;;  %3366 = vmatpush3.bf16.msra.mxu1 %v3597_v32 }
  0x80   :  { %3367 = vmatprep.subr.bf16.mxu1 %v3601_v35 }
  0x82   :  { %628 = vmatpush1.bf16.msra.mxu0 %v3598_v33 }
  0x83   :  { %629 = vmatprep.subr.bf16.mxu0 %v3599_v34  ;;  %3368 = vmatpush3.bf16.msra.mxu1 %v3601_v35 }
  0x84   :  { %3369 = vmatprep.subr.bf16.mxu1 %v3605_v38 }
  0x86   :  { %630 = vmatpush1.bf16.msra.mxu0 %v3602_v36 }
  0x87   :  { %631 = vmatprep.subr.bf16.mxu0 %v3603_v37  ;;  %3370 = vmatpush3.bf16.msra.mxu1 %v3605_v38 }
  0x88   :  { %3371 = vmatprep.subr.bf16.mxu1 %v3609_v42 }
  0x8a   :  { %632 = vmatpush1.bf16.msra.mxu0 %v3606_v40 }
  0x8b   :  { %633 = vmatprep.subr.bf16.mxu0 %v3607_v41  ;;  %3372 = vmatpush3.bf16.msra.mxu1 %v3609_v42 }
  0x8c   :  { %3373 = vmatprep.subr.bf16.mxu1 %v3611_v44 }
  0x8e   :  { %634 = vmatpush1.bf16.msra.mxu0 %v3610_v43 }
  0x8f   :  { %3374 = vmatpush3.bf16.msra.mxu1 %v3611_v44 }
  0xf9   :  { %v421_v5 = vpop.xlane.xlu0 %420  ;;  %v425_v6 = vpop.xlane.xlu1 %424 }
  0xfa   :  { %v429_v7 = vmul.f32 0.0078125, %v421_v5  ;;  %v431_v8 = vmul.f32 0.0078125, %v425_v6 }
  0xfc   :  { %v4212_v9 = vsub.f32 %v411_v0, %v429_v7  ;;  %v4214_v10 = vsub.f32 %v413_v1, %v431_v8  ;;  %v160_v0 = vld [vmem:[#allocation7 + $0x1] ss:$0 sm:$0xff] }
  0xfd   :  { %v423_v11 = vpop.xlane.xlu0 %422  ;;  %v427_v12 = vpop.xlane.xlu1 %426 }
  0xfe   :  { %v430_v13 = vmul.f32 0.0078125, %v423_v11  ;;  %v437_v14 = vmul.f32 %v4212_v9, %v4212_v9  ;;  %v432_v15 = vmul.f32 0.0078125, %v427_v12  ;;  %v439_v18 = vmul.f32 %v4214_v10, %v4214_v10 }
 0x100   :  { %v4218_v16 = vsub.f32 %v412_v2, %v430_v13  ;;  %441 = vadd.xlane.f32.xlu0 %v437_v14  ;;  %v4220_v17 = vsub.f32 %v414_v3, %v432_v15  ;;  %v476_v13 = vlaneseq }
 0x102   :  { %v438_v19 = vmul.f32 %v4218_v16, %v4218_v16  ;;  %v440_v20 = vmul.f32 %v4220_v17, %v4220_v17  ;;  %v4246_v14 = vshrl.u32 %v476_v13, 7 }
 0x104   :  { %445 = vadd.xlane.f32.xlu0 %v439_v18  ;;  %443 = vadd.xlane.f32.xlu1 %v438_v19  ;;  %v4249_v15 = vsub.s32 0, %v4246_v14  ;;  %v486_v19 = vsub.s32 2, %v4246_v14  ;;  %v4258_v31 = vsub.s32 1, %v4246_v14 }
 0x108   :  { %447 = vadd.xlane.f32.xlu1 %v440_v20 }
 0x189   :  { %v442_v45 = vpop.xlane.xlu0 %441 }
 0x18a   :  { %v449_v46 = vmul.f32 0.0078125, %v442_v45 }
 0x18c   :  { %v453_v47 = vadd.f32 1e-12, %v449_v46 }
 0x18d   :  { %v444_v48 = vpop.xlane.xlu1 %443  ;;  %v446_v49 = vpop.xlane.xlu0 %445 }
 0x18e   :  { %3756 = vrsqrt.f32 %v453_v47  ;;  %v450_v50 = vmul.f32 0.0078125, %v444_v48  ;;  %v451_v51 = vmul.f32 0.0078125, %v446_v49 }
 0x190   :  { %v454_v52 = vadd.f32 1e-12, %v450_v50  ;;  %v455_v53 = vadd.f32 1e-12, %v451_v51 }
 0x191   :  { %v448_v54 = vpop.xlane.xlu1 %447 }
 0x192   :  { %3758 = vrsqrt.f32 %v454_v52  ;;  %v452_v55 = vmul.f32 0.0078125, %v448_v54 }
 0x193   :  { %3760 = vrsqrt.f32 %v455_v53 }
 0x194   :  { %v456_v56 = vadd.f32 1e-12, %v452_v55 }
 0x196   :  { %3762 = vrsqrt.f32 %v456_v56 }
 0x19b   :  { %v3757_v57 = vpop.eup %3756 }
 0x19c   :  { %v461_v58 = vmul.f32 %v3757_v57, %v4212_v9  ;;  %v4284_v57 = vld [vmem:[#allocation5] sm:$0xff] }
 0x19e   :  { %v465_v63 = vmul.f32 %v461_v58, %v159_v59 }
 0x19f   :  { %v3759_v60 = vpop.eup %3758 }
 0x1a0   :  { %v3761_v61 = vpop.eup %3760  ;;  %v462_v62 = vmul.f32 %v3759_v60, %v4218_v16  ;;  %v4232_v4 = vadd.f32 %v465_v63, %v160_v0  ;;  %v392_v16 = vld [vmem:[#allocation7 + $0x2] ss:$8 sm:$0x7] }
 0x1a1   :  { %v463_v1 = vmul.f32 %v3761_v61, %v4214_v10  ;;  %v479_v18 = vrot.slane %v392_v16, %v4249_v15  ;;  %v487_v25 = vrot.slane %v392_v16, %v486_v19  ;;  %v483_v41 = vrot.slane %v392_v16, %v4258_v31  ;;  %v4286_v61 = vld [vmem:[#allocation5 + $0x10] sm:$0xff] }
 0x1a2   :  { %v466_v2 = vmul.f32 %v462_v62, %v159_v59 }
 0x1a3   :  { %v3763_v3 = vpop.eup %3762  ;;  %v467_v7 = vmul.f32 %v463_v1, %v159_v59 }
 0x1a4   :  { %v4234_v5 = vadd.f32 %v466_v2, %v160_v0  ;;  %v464_v6 = vmul.f32 %v3763_v3, %v4220_v17 }
 0x1a5   :  { %v4239_v11 = vadd.f32 %v467_v7, %v160_v0  ;;  %v4293_v7 = vld [vmem:[#allocation5 + $0x18] sm:$0xff] }
 0x1a6   :  { %v473_v8 = vpack.c.bf16 %v4234_v5, %v4232_v4  ;;  %v468_v9 = vmul.f32 %v464_v6, %v159_v59 }
 0x1a8   :  { %652 = vmatmul.mubr.bf16.vlgmr.msra.gmra.mxu0 %v473_v8  ;;  %3375 = vmatprep.mubr.bf16.mxu1 %v473_v8  ;;  %v4241_v12 = vadd.f32 %v468_v9, %v160_v0  ;;  %v4289_v0 = vld [vmem:[#allocation5 + $0x8] sm:$0xff] }
 0x1a9   :  { %661 = vmatprep.mubr.bf16.mxu0 %v4105_v39 }
 0x1aa   :  { %v474_v10 = vpack.c.bf16 %v4241_v12, %v4239_v11 }
 0x1ac   :  { %3376 = vmatmul.mubr.bf16.vlgmr.msra.gmra.mxu1 %v474_v10 }
 0x1b0   :  { %662 = vmatmul.mubr.bf16.gmra.mxu0 %v474_v10 }
 0x268   :  { %v653_v17 = vpop.f32.mrf.mxu0 }
 0x269   :  { %v654_v23 = vadd.f32 %v653_v17, %v479_v18 }
 0x26a   :  { %v655_v20 = vpop.f32.mrf.mxu0 }
 0x26b   :  { %v656_v47 = vadd.f32 %v655_v20, %v483_v41 }
 0x26c   :  { %v657_v21 = vpop.f32.mrf.mxu0  ;;  %v3377_v22 = vpop.f32.mrf.mxu1 }
 0x26d   :  { %v658_v24 = vadd.f32 %v657_v21, %v479_v18  ;;  %v715_v32 = vadd.f32 %v3377_v22, %v487_v25 }
 0x26e   :  { %v659_v26 = vpop.f32.mrf.mxu0  ;;  %v706_v27 = vpop.f32.mrf.mxu1 }
 0x26f   :  { %v4255_v28 = vpack.c.bf16 %v658_v24, %v654_v23  ;;  %v707_v36 = vadd.f32 %v706_v27, %v487_v25  ;;  %v660_v44 = vadd.f32 %v659_v26, %v483_v41 }
 0x270   :  { %v663_v29 = vpop.f32.mrf.mxu0  ;;  %v3378_v30 = vpop.f32.mrf.mxu1 }
 0x271   :  { %v718_v33 = vadd.f32 %v3378_v30, %v487_v25  ;;  %3383 = vmatprep.mubr.msk.bf16.mxu0 %vm727_vm0, %v4255_v28  ;;  %v4273_v49 = vpack.c.bf16 %v660_v44, %v656_v47  ;;  %v664_v53 = vadd.f32 %v663_v29, %v479_v18 }
 0x272   :  { %v665_v34 = vpop.f32.mrf.mxu0  ;;  %v709_v35 = vpop.f32.mrf.mxu1 }
 0x273   :  { %v4262_v37 = vpack.c.bf16 %v718_v33, %v715_v32  ;;  %v710_v38 = vadd.f32 %v709_v35, %v487_v25  ;;  %v666_v45 = vadd.f32 %v665_v34, %v483_v41  ;;  %v735_v51 = vsel %vm727_vm0, %v4273_v49, 0 }
 0x274   :  { %v667_v40 = vpop.f32.mrf.mxu0 }
 0x275   :  { %v4265_v42 = vpack.c.bf16 %v710_v38, %v707_v36  ;;  %3387 = vmatprep.subr.bf16.mxu1 %v4262_v37  ;;  %v668_v52 = vadd.f32 %v667_v40, %v479_v18 }
 0x276   :  { %v669_v43 = vpop.f32.mrf.mxu0  ;;  %3388 = vmatpush3.bf16.msra.mxu1 %v4262_v37 }
 0x277   :  { %v670_v46 = vadd.f32 %v669_v43, %v483_v41  ;;  %3389 = vmatprep.subr.bf16.mxu1 %v4265_v42  ;;  %v724_v54 = vpack.c.bf16 %v668_v52, %v664_v53 }
 0x279   :  { %v4270_v48 = vpack.c.bf16 %v670_v46, %v666_v45 }
 0x27a   :  { %3390 = vmatpush3.bf16.msra.mxu1 %v4265_v42 }
 0x27b   :  { %3551 = vmatprep.subr.msk.bf16.mxu0 %vm727_vm0, %v4270_v48  ;;  %v738_v50 = vsel %vm727_vm0, %v4270_v48, 0 }
 0x27c   :  { %3380 = vmatpush3.bf16.xpose.msra.mxu0 %v738_v50 }
 0x27d   :  { %3552 = vmatprep.subr.msk.bf16.mxu0 %vm727_vm0, %v4273_v49 }
 0x284   :  { %3382 = vmatpush3.bf16.xpose.msra.mxu0 %v735_v51 }
 0x28b   :  { %3384 = vmatmul.mubr.msk.bf16.vlgmr.msra.gmra.mxu0 %vm727_vm0, %v724_v54 }
 0x34b   :  { %v3385_v55 = vpop.f32.mrf.mxu0 }
 0x34c   :  { %v791_v58 = vmul.f32 0.125, %v3385_v55 }
 0x34d   :  { %v774_v56 = vpop.f32.mrf.mxu0 }
 0x34e   :  { %v789_v59 = vmul.f32 0.125, %v774_v56  ;;  %v795_v6 = vadd.f32 %v791_v58, %v4286_v61 }
 0x34f   :  { %v3386_v60 = vpop.f32.mrf.mxu0 }
 0x350   :  { %v793_v62 = vadd.f32 %v789_v59, %v4284_v57  ;;  %v792_v1 = vmul.f32 0.125, %v3386_v60  ;;  %v804_v9 = vsel %vm797_vm1, %v795_v6, -inf }
 0x351   :  { %v777_v63 = vpop.f32.mrf.mxu0 }
 0x352   :  { %v790_v2 = vmul.f32 0.125, %v777_v63  ;;  %v798_v3 = vsel %vm797_vm1, %v793_v62, -inf  ;;  %v796_v13 = vadd.f32 %v792_v1, %v4293_v7  ;;  %v3613_v1 = vld [vmem:[#allocation10 + $0x10] sm:$0xff]  }
 0x353   :  { %799 = vmax.xlane.f32.xlu0 %v798_v3  ;;  %v3614_v3 = vld [vmem:[#allocation10 + $0x8] sm:$0xff]  }
 0x354   :  { %v794_v8 = vadd.f32 %v790_v2, %v4289_v0  ;;  %v807_v16 = vsel %vm797_vm1, %v796_v13, -inf }
 0x356   :  { %v801_v10 = vsel %vm797_vm1, %v794_v8, -inf }
 0x357   :  { %805 = vmax.xlane.f32.xlu0 %v804_v9  ;;  %802 = vmax.xlane.f32.xlu1 %v801_v10 }
 0x35b   :  { %808 = vmax.xlane.f32.xlu1 %v807_v16 }
 0x3dc   :  { %v800_v17 = vpop.xlane.xlu0 %799 }
 0x3dd   :  { %v810_v18 = vsub.f32 %v793_v62, %v800_v17  ;;  %v3612_v62 = vld [vmem:[#allocation10 + $0x18] sm:$0xff]  }
 0x3df   :  { %v814_v24 = vmul.f32 1.442695, %v810_v18 }
 0x3e0   :  { %v806_v20 = vpop.xlane.xlu0 %805  ;;  %v803_v21 = vpop.xlane.xlu1 %802 }
 0x3e1   :  { %v812_v22 = vsub.f32 %v795_v6, %v806_v20  ;;  %v811_v23 = vsub.f32 %v794_v8, %v803_v21  ;;  %v3615_v6 = vld [vmem:[#allocation10] sm:$0xff]  }
 0x3e3   :  { %v818_v25 = vmul.f32 1.442695, %v812_v22  ;;  %v816_v26 = vmul.f32 1.442695, %v811_v23 }
 0x3e4   :  { %v809_v27 = vpop.xlane.xlu1 %808 }
 0x3e5   :  { %3764 = vpow2.f32 %v818_v25  ;;  %v813_v29 = vsub.f32 %v796_v13, %v809_v27 }
 0x3e6   :  { %3766 = vpow2.f32 %v816_v26 }
 0x3e7   :  { %3768 = vpow2.f32 %v814_v24  ;;  %v820_v30 = vmul.f32 1.442695, %v813_v29 }
 0x3e9   :  { %3770 = vpow2.f32 %v820_v30 }
 0x3f2   :  { %v3765_v32 = vpop.eup %3764 }
 0x3f3   :  { %v3767_v33 = vpop.eup %3766  ;;  %v828_v34 = vsel %vm797_vm1, %v3765_v32, 0.0 }
 0x3f4   :  { %v3769_v35 = vpop.eup %3768  ;;  %829 = vadd.xlane.f32.xlu0 %v828_v34  ;;  %v825_v36 = vsel %vm797_vm1, %v3767_v33, 0.0 }
 0x3f5   :  { %826 = vadd.xlane.f32.xlu1 %v825_v36  ;;  %v822_v40 = vsel %vm797_vm1, %v3769_v35, 0.0 }
 0x3f6   :  { %v3771_v38 = vpop.eup %3770 }
 0x3f7   :  { %v831_v41 = vsel %vm797_vm1, %v3771_v38, 0.0 }
 0x3f8   :  { %823 = vadd.xlane.f32.xlu0 %v822_v40 }
 0x3f9   :  { %832 = vadd.xlane.f32.xlu1 %v831_v41 }
 0x40a   :  { %909 = vrot.lane.b32.xlu1 %v4273_v49, %s4097_s15 }
 0x40e   :  { %903 = vrot.lane.b32.xlu1 %v4255_v28, %s4097_s15  ;;  %911 = vrot.lane.b32.xlu0 %v4270_v48, %s4097_s15 }
 0x412   :  { %905 = vrot.lane.b32.xlu1 %v724_v54, %s4097_s15 }
 0x47d   :  { %v830_v43 = vpop.xlane.xlu0 %829 }
 0x47e   :  { %v827_v44 = vpop.xlane.xlu1 %826 }
 0x47f   :  { %3772 = vrcp.f32 %v827_v44 }
 0x480   :  { %3774 = vrcp.f32 %v830_v43 }
 0x481   :  { %v824_v45 = vpop.xlane.xlu0 %823 }
 0x482   :  { %3776 = vrcp.f32 %v824_v45  ;;  %v833_v46 = vpop.xlane.xlu1 %832 }
 0x483   :  { %3778 = vrcp.f32 %v833_v46 }
 0x485   :  { %v912_v47 = vpop.permute.xlu0 %911 }
 0x486   :  { %3553 = vmatprep.subr.msk.bf16.mxu1 %vm727_vm0, %v912_v47  ;;  %v910_v28 = vpop.permute.xlu1 %909  ;;  %v923_v59 = vsel %vm727_vm0, %v912_v47, 0 }
 0x487   :  { %v920_v63 = vsel %vm727_vm0, %v910_v28, 0 }
 0x48a   :  { %v904_v60 = vpop.permute.xlu1 %903 }
 0x48c   :  { %v3773_v49 = vpop.eup %3772 }
 0x48d   :  { %v3775_v50 = vpop.eup %3774  ;;  %v837_v48 = vmul.f32 %v3773_v49, %v3767_v33 }
 0x48e   :  { %v839_v55 = vmul.f32 %v3775_v50, %v3765_v32  ;;  %v906_v2 = vpop.permute.xlu1 %905 }
 0x48f   :  { %v3777_v51 = vpop.eup %3776 }
 0x490   :  { %v3779_v52 = vpop.eup %3778  ;;  %v835_v53 = vmul.f32 %v3777_v51, %v3769_v35 }
 0x491   :  { %v841_v54 = vmul.f32 %v3779_v52, %v3771_v38 }
 0x492   :  { %v842_v56 = vpack.c.bf16 %v837_v48, %v835_v53 }
 0x493   :  { %v843_v58 = vpack.c.bf16 %v841_v54, %v839_v55 }
 0x494   :  { %3391 = vmatprep.mubr.msk.bf16.mxu1 %vm797_vm1, %v842_v56 }
 0x495   :  { %3392 = vmatmul.mubr.msk.bf16.vlgmr.msra.gmra.mxu1 %vm797_vm1, %v843_v58 }
 0x496   :  { %3396 = vmatpush3.bf16.xpose.msra.mxu1 %v923_v59  ;;  %3399 = vmatprep.mubr.msk.bf16.mxu1 %vm727_vm0, %v904_v60 }
 0x497   :  { %3554 = vmatprep.subr.msk.bf16.mxu1 %vm727_vm0, %v910_v28 }
 0x49e   :  { %3398 = vmatpush3.bf16.xpose.msra.mxu1 %v920_v63 }
 0x49f   :  { %3423 = vmatprep.subr.bf16.mxu1 %v3612_v62 }
 0x4a5   :  { %3400 = vmatmul.mubr.msk.bf16.vlgmr.msra.gmra.mxu1 %vm727_vm0, %v906_v2 }
 0x4a6   :  { %3424 = vmatpush3.bf16.msra.mxu1 %v3612_v62  ;;  %v3616_v62 = vld [vmem:[#allocation10 + $0x38] sm:$0xff]  }
 0x4a7   :  { %3425 = vmatprep.subr.bf16.mxu1 %v3613_v1 }
 0x4aa   :  { %3426 = vmatpush3.bf16.msra.mxu1 %v3613_v1 }
 0x4ab   :  { %3427 = vmatprep.subr.bf16.mxu1 %v3614_v3 }
 0x4ae   :  { %3428 = vmatpush3.bf16.msra.mxu1 %v3614_v3 }
 0x4af   :  { %3429 = vmatprep.subr.bf16.mxu1 %v3615_v6 }
 0x4b2   :  { %3430 = vmatpush3.bf16.msra.mxu1 %v3615_v6 }
 0x555   :  { %v3393_v8 = vpop.f32.mrf.mxu1 }
 0x557   :  { %v884_v9 = vpop.f32.mrf.mxu1 }
 0x559   :  { %v3394_v10 = vpop.f32.mrf.mxu1 }
 0x55a   :  { %v900_v17 = vpack.c.bf16 %v3394_v10, %v3393_v8 }
 0x55b   :  { %v887_v13 = vpop.f32.mrf.mxu1 }
 0x55c   :  { %v899_v16 = vpack.c.bf16 %v887_v13, %v884_v9 }
 0x55e   :  { %3431 = vmatprep.mubr.msk.bf16.mxu1 %vm727_vm0, %v899_v16  ;;  %v3617_v16 = vld [vmem:[#allocation10 + $0x30] sm:$0xff]  }
 0x55f   :  { %3432 = vmatmul.mubr.msk.bf16.vlgmr.msra.gmra.mxu1 %vm727_vm0, %v900_v17  ;;  %v3618_v17 = vld [vmem:[#allocation10 + $0x28] sm:$0xff]  }
 0x565   :  { %v3401_v18 = vpop.f32.mrf.mxu1 }
 0x566   :  { %v976_v21 = vmul.f32 0.125, %v3401_v18  ;;  %v3619_v18 = vld [vmem:[#allocation10 + $0x20] sm:$0xff]  }
 0x567   :  { %v959_v20 = vpop.f32.mrf.mxu1 }
 0x568   :  { %v974_v22 = vmul.f32 0.125, %v959_v20  ;;  %v980_v30 = vadd.f32 %v976_v21, %v4286_v61 }
 0x569   :  { %v3402_v23 = vpop.f32.mrf.mxu1 }
 0x56a   :  { %v978_v24 = vadd.f32 %v974_v22, %v4284_v57  ;;  %v977_v26 = vmul.f32 0.125, %v3402_v23  ;;  %v988_v33 = vsel %vm797_vm1, %v980_v30, -inf }
 0x56b   :  { %v962_v25 = vpop.f32.mrf.mxu1 }
 0x56c   :  { %v975_v27 = vmul.f32 0.125, %v962_v25  ;;  %v982_v29 = vsel %vm797_vm1, %v978_v24, -inf  ;;  %v981_v35 = vadd.f32 %v977_v26, %v4293_v7 }
 0x56d   :  { %983 = vmax.xlane.f32.xlu0 %v982_v29 }
 0x56e   :  { %v979_v32 = vadd.f32 %v975_v27, %v4289_v0  ;;  %v991_v57 = vsel %vm797_vm1, %v981_v35, -inf }
 0x570   :  { %v985_v34 = vsel %vm797_vm1, %v979_v32, -inf }
 0x571   :  { %989 = vmax.xlane.f32.xlu0 %v988_v33  ;;  %986 = vmax.xlane.f32.xlu1 %v985_v34 }
 0x575   :  { %992 = vmax.xlane.f32.xlu0 %v991_v57 }
 0x5f6   :  { %v984_v36 = vpop.xlane.xlu0 %983 }
 0x5f7   :  { %v994_v38 = vsub.f32 %v978_v24, %v984_v36 }
 0x5f9   :  { %v998_v61 = vmul.f32 1.442695, %v994_v38 }
 0x5fa   :  { %v990_v40 = vpop.xlane.xlu0 %989  ;;  %v987_v41 = vpop.xlane.xlu1 %986 }
 0x5fb   :  { %v996_v43 = vsub.f32 %v980_v30, %v990_v40  ;;  %v995_v45 = vsub.f32 %v979_v32, %v987_v41  ;;  %v393_v40 = vld [vmem:[#allocation7 + $0x3] ss:$0 sm:$0xff] }
 0x5fd   :  { %v1002_v44 = vmul.f32 1.442695, %v996_v43  ;;  %v1000_v47 = vmul.f32 1.442695, %v995_v45 }
 0x5fe   :  { %v993_v0 = vpop.xlane.xlu0 %992 }
 0x5ff   :  { %3780 = vpow2.f32 %v1002_v44  ;;  %v997_v46 = vsub.f32 %v981_v35, %v993_v0 }
 0x600   :  { %3782 = vpow2.f32 %v998_v61 }
 0x601   :  { %v1004_v49 = vmul.f32 1.442695, %v997_v46 }
 0x603   :  { %3784 = vpow2.f32 %v1004_v49 }
 0x604   :  { %3786 = vpow2.f32 %v1000_v47 }
 0x60c   :  { %v3781_v7 = vpop.eup %3780 }
 0x60d   :  { %v1012_v50 = vsel %vm797_vm1, %v3781_v7, 0.0  ;;  %v3783_v51 = vpop.eup %3782 }
 0x60e   :  { %1013 = vadd.xlane.f32.xlu0 %v1012_v50  ;;  %v1006_v52 = vsel %vm797_vm1, %v3783_v51, 0.0 }
 0x610   :  { %v3785_v28 = vpop.eup %3784 }
 0x611   :  { %v1015_v53 = vsel %vm797_vm1, %v3785_v28, 0.0  ;;  %v3787_v48 = vpop.eup %3786 }
 0x612   :  { %1007 = vadd.xlane.f32.xlu0 %v1006_v52  ;;  %1016 = vadd.xlane.f32.xlu1 %v1015_v53  ;;  %v1009_v55 = vsel %vm797_vm1, %v3787_v48, 0.0 }
 0x616   :  { %1010 = vadd.xlane.f32.xlu1 %v1009_v55 }
 0x61f   :  { %v3433_v26 = vpop.f32.mrf.mxu1 }
 0x621   :  { %v1236_v27 = vpop.f32.mrf.mxu1 }
 0x623   :  { %v3434_v30 = vpop.f32.mrf.mxu1 }
 0x625   :  { %v1239_v36 = vpop.f32.mrf.mxu1 }
 0x627   :  { %1030 = vrot.lane.b32.xlu1 %v4265_v42, %s4097_s15 }
 0x628   :  { %1032 = vrot.lane.b32.xlu0 %v4262_v37, %s4097_s15 }
 0x697   :  { %v1014_v54 = vpop.xlane.xlu0 %1013 }
 0x69b   :  { %v1008_v56 = vpop.xlane.xlu0 %1007  ;;  %v1017_v58 = vpop.xlane.xlu1 %1016 }
 0x69c   :  { %3788 = vrcp.f32 %v1017_v58 }
 0x69d   :  { %3790 = vrcp.f32 %v1008_v56 }
 0x69e   :  { %3792 = vrcp.f32 %v1014_v54 }
 0x69f   :  { %v1033_v59 = vpop.permute.xlu0 %1032  ;;  %v1011_v60 = vpop.xlane.xlu1 %1010 }
 0x6a0   :  { %3794 = vrcp.f32 %v1011_v60  ;;  %3403 = vmatprep.subr.bf16.mxu0 %v1033_v59 }
 0x6a1   :  { %3404 = vmatpush3.bf16.msra.mxu0 %v1033_v59 }
 0x6a3   :  { %v1031_v63 = vpop.permute.xlu1 %1030 }
 0x6a4   :  { %3405 = vmatprep.subr.bf16.mxu0 %v1031_v63 }
 0x6a5   :  { %3406 = vmatpush3.bf16.msra.mxu0 %v1031_v63  ;;  %v3625_v63 = vld [vmem:[#allocation11 + $0x64] ss:$8 sps:$4 sm:$0xff]  }
 0x6a6   :  { %3411 = vmatprep.subr.bf16.mxu0 %v3616_v62 }
 0x6a9   :  { %v3789_v42 = vpop.eup %3788 }
 0x6aa   :  { %v3791_v1 = vpop.eup %3790  ;;  %v1025_v3 = vmul.f32 %v3789_v42, %v3785_v28  ;;  %v3623_v42 = vld [vmem:[#allocation11 + $0x60] ss:$8 sps:$4 sm:$0xff]  }
 0x6ab   :  { %v3793_v2 = vpop.eup %3792  ;;  %v1019_v6 = vmul.f32 %v3791_v1, %v3783_v51  ;;  %v3628_v1 = vld [vmem:[#allocation11 + $0x54] ss:$8 sps:$4 sm:$0xff]  }
 0x6ac   :  { %v1023_v9 = vmul.f32 %v3793_v2, %v3781_v7  ;;  %v3622_v7 = vld [vmem:[#allocation11 + $0x74] ss:$8 sps:$4 sm:$0xff]   ;;  %v3626_v2 = vld [vmem:[#allocation11 + $0x50] ss:$8 sps:$4 sm:$0xff]  }
 0x6ad   :  { %v3795_v37 = vpop.eup %3794 }
 0x6ae   :  { %v1021_v8 = vmul.f32 %v3795_v37, %v3787_v48  ;;  %v1027_v13 = vpack.c.bf16 %v1025_v3, %v1023_v9  ;;  %v3631_v37 = vld [vmem:[#allocation11 + $0x44] ss:$8 sps:$4 sm:$0xff]   ;;  %v3629_v3 = vld [vmem:[#allocation11 + $0x40] ss:$8 sps:$4 sm:$0xff]  }
 0x6af   :  { %v3637_v9 = vld [vmem:[#allocation11 + $0x24] ss:$8 sps:$4 sm:$0xff]  }
 0x6b0   :  { %v1026_v10 = vpack.c.bf16 %v1021_v8, %v1019_v6  ;;  %v3632_v6 = vld [vmem:[#allocation11 + $0x30] ss:$8 sps:$4 sm:$0xff]   ;;  %v3634_v8 = vld [vmem:[#allocation11 + $0x34] ss:$8 sps:$4 sm:$0xff]  }
 0x6b2   :  { %3407 = vmatprep.mubr.msk.bf16.mxu0 %vm797_vm1, %v1026_v10  ;;  %v3635_v10 = vld [vmem:[#allocation11 + $0x20] ss:$8 sps:$4 sm:$0xff]  }
 0x6b3   :  { %3408 = vmatmul.mubr.msk.bf16.vlgmr.msra.gmra.mxu0 %vm797_vm1, %v1027_v13  ;;  %v3640_v13 = vld [vmem:[#allocation11 + $0x14] ss:$8 sps:$4 sm:$0xff]  }
 0x6b4   :  { %3412 = vmatpush3.bf16.msra.mxu0 %v3616_v62 }
 0x6b5   :  { %3413 = vmatprep.subr.bf16.mxu0 %v3617_v16 }
 0x6b8   :  { %3414 = vmatpush3.bf16.msra.mxu0 %v3617_v16  ;;  %v3638_v16 = vld [vmem:[#allocation11 + $0x10] ss:$8 sps:$4 sm:$0xff]  }
 0x6b9   :  { %3415 = vmatprep.subr.bf16.mxu0 %v3618_v17 }
 0x6bc   :  { %3416 = vmatpush3.bf16.msra.mxu0 %v3618_v17  ;;  %v3643_v17 = vld [vmem:[#allocation11 + $0x4] ss:$8 sps:$4 sm:$0xff]  }
 0x6bd   :  { %3417 = vmatprep.subr.bf16.mxu0 %v3619_v18 }
 0x6c0   :  { %3418 = vmatpush3.bf16.msra.mxu0 %v3619_v18  ;;  %v3641_v18 = vld [vmem:[#allocation11] ss:$8 sps:$4 sm:$0xff]  }
 0x6c1   :  { %1404 = vmatprep.subr.bf16.mxu0 %v3622_v7 }
 0x773   :  { %v3409_v20 = vpop.f32.mrf.mxu0 }
 0x775   :  { %v1076_v21 = vpop.f32.mrf.mxu0 }
 0x777   :  { %v3410_v22 = vpop.f32.mrf.mxu0 }
 0x778   :  { %v1092_v25 = vpack.c.bf16 %v3410_v22, %v3409_v20 }
 0x779   :  { %v1079_v23 = vpop.f32.mrf.mxu0 }
 0x77a   :  { %v1091_v24 = vpack.c.bf16 %v1079_v23, %v1076_v21 }
 0x77c   :  { %3419 = vmatprep.mubr.msk.bf16.mxu0 %vm727_vm0, %v1091_v24 }
 0x77d   :  { %3420 = vmatmul.mubr.msk.bf16.vlgmr.msra.gmra.mxu0 %vm727_vm0, %v1092_v25 }
 0x77e   :  { %1436 = vmatprep.mubr.bf16.mxu0 %v4105_v39 }
 0x83d   :  { %v3421_v29 = vpop.f32.mrf.mxu0 }
 0x83e   :  { %v1245_v41 = vadd.f32 %v3433_v26, %v3421_v29 }
 0x83f   :  { %v1157_v32 = vpop.f32.mrf.mxu0 }
 0x840   :  { %v1237_v33 = vadd.f32 %v1236_v27, %v1157_v32  ;;  %v1253_v0 = vadd.f32 %v1245_v41, %v4239_v11  ;;  %v395_v41 = vld [vmem:[#allocation7 + $0x5] ss:$0 sm:$0xff] }
 0x841   :  { %v3422_v34 = vpop.f32.mrf.mxu0 }
 0x842   :  { %v1251_v35 = vadd.f32 %v1237_v33, %v4232_v4  ;;  %v1248_v57 = vadd.f32 %v3434_v30, %v3422_v34  ;;  %v1257_v49 = vadd.f32 %v1253_v0, %v393_v40  ;;  %v3620_v4 = vld [vmem:[#allocation11 + $0x70] ss:$8 sps:$4 sm:$0xff]  }
 0x843   :  { %v1160_v38 = vpop.f32.mrf.mxu0  ;;  %1405 = vmatpush1.bf16.msra.mxu0 %v3620_v4 }
 0x844   :  { %v1254_v43 = vadd.f32 %v1248_v57, %v4241_v12  ;;  %v1240_v61 = vadd.f32 %v1239_v36, %v1160_v38  ;;  %v1255_v44 = vadd.f32 %v1251_v35, %v393_v40  ;;  %1406 = vmatprep.subr.bf16.mxu0 %v3625_v63  ;;  %v394_v57 = vld [vmem:[#allocation7 + $0x4] ss:$0 sm:$0xff]  ;;  %v3657_v63 = vld [vmem:[#allocation13 + $0x8] sm:$0xff]  }
 0x846   :  { %v1252_v45 = vadd.f32 %v1240_v61, %v4234_v5  ;;  %1259 = vadd.xlane.f32.xlu1 %v1255_v44  ;;  %v1258_v46 = vadd.f32 %v1254_v43, %v393_v40 }
 0x847   :  { %1407 = vmatpush1.bf16.msra.mxu0 %v3623_v42  ;;  %v3658_v42 = vld [vmem:[#allocation13 + $0x40] sm:$0xff]  }
 0x848   :  { %v1256_v47 = vadd.f32 %v1252_v45, %v393_v40  ;;  %1408 = vmatprep.subr.bf16.mxu0 %v3628_v1  ;;  %v3659_v1 = vld [vmem:[#allocation13] sm:$0xff]  }
 0x84a   :  { %1265 = vadd.xlane.f32.xlu1 %v1258_v46  ;;  %1261 = vadd.xlane.f32.xlu0 %v1256_v47 }
 0x84b   :  { %1409 = vmatpush1.bf16.msra.mxu0 %v3626_v2  ;;  %v397_v2 = vld [vmem:[#allocation7 + $0x6] ss:$8 sm:$0x3] }
 0x84c   :  { %1410 = vmatprep.subr.bf16.mxu0 %v3631_v37  ;;  %v1317_v37 = vrot.slane %v397_v2, %v4249_v15 }
 0x84e   :  { %1263 = vadd.xlane.f32.xlu0 %v1257_v49 }
 0x84f   :  { %1411 = vmatpush1.bf16.msra.mxu0 %v3629_v3  ;;  %v1321_v3 = vrot.slane %v397_v2, %v4258_v31 }
 0x850   :  { %1412 = vmatprep.subr.bf16.mxu0 %v3634_v8 }
 0x853   :  { %1413 = vmatpush1.bf16.msra.mxu0 %v3632_v6 }
 0x854   :  { %1414 = vmatprep.subr.bf16.mxu0 %v3637_v9 }
 0x857   :  { %1415 = vmatpush1.bf16.msra.mxu0 %v3635_v10 }
 0x858   :  { %1416 = vmatprep.subr.bf16.mxu0 %v3640_v13 }
 0x85b   :  { %1417 = vmatpush1.bf16.msra.mxu0 %v3638_v16 }
 0x85c   :  { %1418 = vmatprep.subr.bf16.mxu0 %v3643_v17 }
 0x85f   :  { %1419 = vmatpush1.bf16.msra.mxu0 %v3641_v18 }
 0x8cf   :  { %v1260_v50 = vpop.xlane.xlu1 %1259 }
 0x8d0   :  { %v1267_v51 = vmul.f32 0.0078125, %v1260_v50 }
 0x8d2   :  { %v4346_v12 = vsub.f32 %v1255_v44, %v1267_v51 }
 0x8d3   :  { %v1266_v28 = vpop.xlane.xlu1 %1265  ;;  %v1262_v52 = vpop.xlane.xlu0 %1261 }
 0x8d4   :  { %v1270_v5 = vmul.f32 0.0078125, %v1266_v28  ;;  %v1268_v53 = vmul.f32 0.0078125, %v1262_v52  ;;  %v1275_v11 = vmul.f32 %v4346_v12, %v4346_v12  ;;  %v3644_v28 = vld [vmem:[#allocation13 + $0x78] sm:$0xff]  }
 0x8d5   :  { %v3645_v52 = vld [vmem:[#allocation13 + $0x38] sm:$0xff]   ;;  %3253 = vmatprep.subr.bf16.mxu1 %v3644_v28 }
 0x8d6   :  { %v1272_v48 = vsub.f32 %v1256_v47, %v1268_v53  ;;  %1279 = vadd.xlane.f32.xlu0 %v1275_v11  ;;  %v4350_v54 = vsub.f32 %v1258_v46, %v1270_v5  ;;  %3254 = vmatpush3.bf16.msra.mxu1 %v3645_v52  ;;  %v3646_v5 = vld [vmem:[#allocation13 + $0x70] sm:$0xff]   ;;  %v3648_v11 = vld [vmem:[#allocation13 + $0x68] sm:$0xff]  }
 0x8d7   :  { %v1264_v55 = vpop.xlane.xlu0 %1263  ;;  %v3647_v53 = vld [vmem:[#allocation13 + $0x30] sm:$0xff]   ;;  %3255 = vmatprep.subr.bf16.mxu1 %v3646_v5 }
 0x8d8   :  { %v1269_v56 = vmul.f32 0.0078125, %v1264_v55  ;;  %v1276_v58 = vmul.f32 %v1272_v48, %v1272_v48  ;;  %v1278_v60 = vmul.f32 %v4350_v54, %v4350_v54  ;;  %v3650_v55 = vld [vmem:[#allocation13 + $0x60] sm:$0xff]  }
 0x8da   :  { %v4352_v59 = vsub.f32 %v1257_v49, %v1269_v56  ;;  %1281 = vadd.xlane.f32.xlu1 %v1276_v58  ;;  %3256 = vmatpush3.bf16.msra.mxu1 %v3647_v53  ;;  %v3652_v56 = vld [vmem:[#allocation13 + $0x58] sm:$0xff]  }
 0x8db   :  { %3257 = vmatprep.subr.bf16.mxu1 %v3648_v11  ;;  %v3653_v58 = vld [vmem:[#allocation13 + $0x18] sm:$0xff]  }
 0x8dc   :  { %v1277_v62 = vmul.f32 %v4352_v59, %v4352_v59 }
 0x8de   :  { %1285 = vadd.xlane.f32.xlu1 %v1278_v60  ;;  %1283 = vadd.xlane.f32.xlu0 %v1277_v62  ;;  %v3655_v60 = vld [vmem:[#allocation13 + $0x10] sm:$0xff]   ;;  %v3656_v62 = vld [vmem:[#allocation13 + $0x48] sm:$0xff]  }
 0x95f   :  { %v1280_v20 = vpop.xlane.xlu0 %1279 }
 0x960   :  { %v1287_v21 = vmul.f32 0.0078125, %v1280_v20 }
 0x962   :  { %v1291_v22 = vadd.f32 1e-12, %v1287_v21 }
 0x963   :  { %v1282_v23 = vpop.xlane.xlu1 %1281 }
 0x964   :  { %3796 = vrsqrt.f32 %v1291_v22  ;;  %v1288_v24 = vmul.f32 0.0078125, %v1282_v23 }
 0x966   :  { %v1292_v25 = vadd.f32 1e-12, %v1288_v24 }
 0x967   :  { %v1286_v26 = vpop.xlane.xlu1 %1285  ;;  %v1284_v27 = vpop.xlane.xlu0 %1283 }
 0x968   :  { %3798 = vrsqrt.f32 %v1292_v25  ;;  %v1290_v29 = vmul.f32 0.0078125, %v1286_v26  ;;  %v1289_v30 = vmul.f32 0.0078125, %v1284_v27 }
 0x96a   :  { %v1294_v32 = vadd.f32 1e-12, %v1290_v29  ;;  %v1293_v33 = vadd.f32 1e-12, %v1289_v30 }
 0x96c   :  { %3800 = vrsqrt.f32 %v1294_v32 }
 0x96d   :  { %3802 = vrsqrt.f32 %v1293_v33 }
 0x971   :  { %v3797_v34 = vpop.eup %3796 }
 0x972   :  { %v1299_v35 = vmul.f32 %v3797_v34, %v4346_v12 }
 0x974   :  { %v1303_v40 = vmul.f32 %v1299_v35, %v394_v57 }
 0x975   :  { %v3799_v36 = vpop.eup %3798 }
 0x976   :  { %v1300_v38 = vmul.f32 %v3799_v36, %v1272_v48  ;;  %v4359_v45 = vadd.f32 %v1303_v40, %v395_v41  ;;  %v3649_v48 = vld [vmem:[#allocation13 + $0x28] sm:$0xff]  }
 0x977   :  { %3258 = vmatpush3.bf16.msra.mxu1 %v3649_v48 }
 0x978   :  { %v1304_v43 = vmul.f32 %v1300_v38, %v394_v57  ;;  %3259 = vmatprep.subr.bf16.mxu1 %v3650_v55 }
 0x979   :  { %v3801_v61 = vpop.eup %3800 }
 0x97a   :  { %v3803_v44 = vpop.eup %3802  ;;  %v4361_v0 = vadd.f32 %v1304_v43, %v395_v41  ;;  %v1302_v46 = vmul.f32 %v3801_v61, %v4350_v54  ;;  %v3651_v54 = vld [vmem:[#allocation13 + $0x20] sm:$0xff]  }
 0x97b   :  { %v1301_v47 = vmul.f32 %v3803_v44, %v4352_v59  ;;  %3260 = vmatpush3.bf16.msra.mxu1 %v3651_v54  ;;  %v3654_v59 = vld [vmem:[#allocation13 + $0x50] sm:$0xff]  }
 0x97c   :  { %v1311_v49 = vpack.c.bf16 %v4361_v0, %v4359_v45  ;;  %v1306_v4 = vmul.f32 %v1302_v46, %v394_v57  ;;  %3261 = vmatprep.subr.bf16.mxu1 %v3652_v56 }
 0x97d   :  { %v1305_v7 = vmul.f32 %v1301_v47, %v394_v57 }
 0x97e   :  { %1437 = vmatmul.mubr.bf16.vlgmr.msra.gmra.mxu0 %v1311_v49  ;;  %v4370_v51 = vadd.f32 %v1306_v4, %v395_v41 }
 0x97f   :  { %1446 = vmatprep.mubr.bf16.mxu0 %v4105_v39  ;;  %v4368_v50 = vadd.f32 %v1305_v7, %v395_v41  ;;  %3262 = vmatpush3.bf16.msra.mxu1 %v3653_v58 }
 0x980   :  { %3263 = vmatprep.subr.bf16.mxu1 %v3654_v59 }
 0x981   :  { %v1312_v12 = vpack.c.bf16 %v4370_v51, %v4368_v50 }
 0x983   :  { %3264 = vmatpush3.bf16.msra.mxu1 %v3655_v60 }
 0x984   :  { %3265 = vmatprep.subr.bf16.mxu1 %v3656_v62 }
 0x986   :  { %1447 = vmatmul.mubr.bf16.gmra.mxu0 %v1312_v12 }
 0x987   :  { %1912 = vmatprep.mubr.bf16.mxu0 %v4105_v39  ;;  %3266 = vmatpush3.bf16.msra.mxu1 %v3657_v63 }
 0x988   :  { %3267 = vmatprep.subr.bf16.mxu1 %v3658_v42 }
 0x98b   :  { %3268 = vmatpush3.bf16.msra.mxu1 %v3659_v1 }
 0xa3e   :  { %v1438_v6 = vpop.f32.mrf.mxu0 }
 0xa3f   :  { %v4377_v8 = vadd.f32 %v1438_v6, %v1317_v37 }
 0xa40   :  { %v1440_v9 = vpop.f32.mrf.mxu0 }
 0xa41   :  { %v1465_v10 = vmul.f32 0.044715, %v4377_v8  ;;  %v4380_v13 = vadd.f32 %v1440_v9, %v1321_v3 }
 0xa42   :  { %v1442_v16 = vpop.f32.mrf.mxu0 }
 0xa43   :  { %v1473_v17 = vmul.f32 %v1465_v10, %v4377_v8  ;;  %v1466_v18 = vmul.f32 0.044715, %v4380_v13  ;;  %v1443_v20 = vadd.f32 %v1442_v16, %v1317_v37 }
 0xa44   :  { %v1444_v21 = vpop.f32.mrf.mxu0 }
 0xa45   :  { %v1481_v22 = vmul.f32 %v1473_v17, %v4377_v8  ;;  %v1474_v23 = vmul.f32 %v1466_v18, %v4380_v13  ;;  %v1467_v24 = vmul.f32 0.044715, %v1443_v20  ;;  %v1445_v25 = vadd.f32 %v1444_v21, %v1321_v3 }
 0xa46   :  { %v1448_v26 = vpop.f32.mrf.mxu0 }
 0xa47   :  { %v1489_v27 = vadd.f32 %v1481_v22, %v4377_v8  ;;  %v1482_v29 = vmul.f32 %v1474_v23, %v4380_v13  ;;  %v1475_v30 = vmul.f32 %v1467_v24, %v1443_v20  ;;  %v1468_v32 = vmul.f32 0.044715, %v1445_v25 }
 0xa48   :  { %v4388_v33 = vadd.f32 %v1448_v26, %v1317_v37  ;;  %v1450_v34 = vpop.f32.mrf.mxu0  ;;  %v1459_v22 = vmul.f32 0.5, %v1443_v20  ;;  %v1458_v24 = vmul.f32 0.5, %v4380_v13  ;;  %v1460_v26 = vmul.f32 0.5, %v1445_v25 }
 0xa49   :  { %v1497_v35 = vmul.f32 0.7978846, %v1489_v27  ;;  %v1483_v57 = vmul.f32 %v1475_v30, %v1443_v20  ;;  %v1476_v36 = vmul.f32 %v1468_v32, %v1445_v25  ;;  %v4390_v38 = vadd.f32 %v1450_v34, %v1321_v3 }
 0xa4a   :  { %v1469_v40 = vmul.f32 0.044715, %v4388_v33  ;;  %v1452_v41 = vpop.f32.mrf.mxu0  ;;  %v1490_v43 = vadd.f32 %v1482_v29, %v4380_v13  ;;  %v1457_v29 = vmul.f32 0.5, %v4377_v8 }
 0xa4b   :  { %v1491_v61 = vadd.f32 %v1483_v57, %v1443_v20  ;;  %v1484_v44 = vmul.f32 %v1476_v36, %v1445_v25  ;;  %v1470_v46 = vmul.f32 0.044715, %v4390_v38  ;;  %3804 = vtanh.f32 %v1497_v35 }
 0xa4c   :  { %v1477_v47 = vmul.f32 %v1469_v40, %v4388_v33  ;;  %v1453_v49 = vadd.f32 %v1452_v41, %v1317_v37  ;;  %v1454_v4 = vpop.f32.mrf.mxu0  ;;  %v1498_v7 = vmul.f32 0.7978846, %v1490_v43 }
 0xa4d   :  { %v1499_v12 = vmul.f32 0.7978846, %v1491_v61  ;;  %v1478_v28 = vmul.f32 %v1470_v46, %v4390_v38  ;;  %v1455_v52 = vadd.f32 %v1454_v4, %v1321_v3  ;;  %v1492_v5 = vadd.f32 %v1484_v44, %v1445_v25 }
 0xa4e   :  { %v1485_v53 = vmul.f32 %v1477_v47, %v4388_v33  ;;  %v1471_v11 = vmul.f32 0.044715, %v1453_v49  ;;  %3806 = vtanh.f32 %v1498_v7  ;;  %v1463_v20 = vmul.f32 0.5, %v1453_v49 }
 0xa4f   :  { %3808 = vtanh.f32 %v1499_v12  ;;  %v1486_v48 = vmul.f32 %v1478_v28, %v4390_v38  ;;  %v1472_v55 = vmul.f32 0.044715, %v1455_v52  ;;  %v1500_v54 = vmul.f32 0.7978846, %v1492_v5 }
 0xa50   :  { %v1479_v56 = vmul.f32 %v1471_v11, %v1453_v49  ;;  %v1493_v58 = vadd.f32 %v1485_v53, %v4388_v33  ;;  %v1462_v25 = vmul.f32 0.5, %v4390_v38  ;;  %v1464_v47 = vmul.f32 0.5, %v1455_v52 }
 0xa51   :  { %v1480_v59 = vmul.f32 %v1472_v55, %v1455_v52  ;;  %3810 = vtanh.f32 %v1500_v54  ;;  %v1494_v60 = vadd.f32 %v1486_v48, %v4390_v38  ;;  %v1461_v4 = vmul.f32 0.5, %v4388_v33  ;;  %v398_v55 = vld [vmem:[#allocation7 + $0x7] ss:$0 sm:$0xff] }
 0xa52   :  { %v1487_v62 = vmul.f32 %v1479_v56, %v1453_v49  ;;  %v1501_v63 = vmul.f32 0.7978846, %v1493_v58 }
 0xa53   :  { %v1488_v42 = vmul.f32 %v1480_v59, %v1455_v52  ;;  %v1502_v1 = vmul.f32 0.7978846, %v1494_v60 }
 0xa54   :  { %v1495_v2 = vadd.f32 %v1487_v62, %v1453_v49 }
 0xa55   :  { %v1496_v37 = vadd.f32 %v1488_v42, %v1455_v52  ;;  %3812 = vtanh.f32 %v1502_v1 }
 0xa56   :  { %v1503_v3 = vmul.f32 0.7978846, %v1495_v2  ;;  %3814 = vtanh.f32 %v1501_v63 }
 0xa57   :  { %v1504_v6 = vmul.f32 0.7978846, %v1496_v37 }
 0xa58   :  { %3816 = vtanh.f32 %v1503_v3  ;;  %v3805_v9 = vpop.eup %3804 }
 0xa59   :  { %3818 = vtanh.f32 %v1504_v6  ;;  %v1513_v23 = vadd.f32 1.0, %v3805_v9 }
 0xa5b   :  { %v3807_v10 = vpop.eup %3806  ;;  %v1521_v57 = vmul.f32 %v1513_v23, %v1457_v29 }
 0xa5c   :  { %v3809_v16 = vpop.eup %3808  ;;  %v1514_v17 = vadd.f32 1.0, %v3807_v10 }
 0xa5d   :  { %v1515_v18 = vadd.f32 1.0, %v3809_v16  ;;  %v3662_v16 = vld [vmem:[#allocation8 + $0x16c] ss:$12 sps:$4 sm:$0xff]  }
 0xa5e   :  { %v3811_v21 = vpop.eup %3810  ;;  %v1522_v32 = vmul.f32 %v1514_v17, %v1458_v24  ;;  %1880 = vmatprep.subr.bf16.mxu0 %v3662_v16 }
 0xa5f   :  { %v1516_v27 = vadd.f32 1.0, %v3811_v21  ;;  %v1523_v30 = vmul.f32 %v1515_v18, %v1459_v22 }
 0xa61   :  { %v1524_v34 = vmul.f32 %v1516_v27, %v1460_v26  ;;  %v1529_v41 = vpack.c.bf16 %v1523_v30, %v1521_v57  ;;  %v3665_v57 = vld [vmem:[#allocation8 + $0x154] ss:$12 sps:$4 sm:$0xff]  }
 0xa62   :  { %v3813_v35 = vpop.eup %3812 }
 0xa63   :  { %v3815_v36 = vpop.eup %3814  ;;  %v1530_v40 = vpack.c.bf16 %v1524_v34, %v1522_v32  ;;  %v1518_v61 = vadd.f32 1.0, %v3813_v35 }
 0xa64   :  { %v1517_v46 = vadd.f32 1.0, %v3815_v36  ;;  %v3663_v36 = vld [vmem:[#allocation8 + $0x150] ss:$12 sps:$4 sm:$0xff]  }
 0xa65   :  { %v3817_v43 = vpop.eup %3816  ;;  %1661 = vmatprep.mubr.bf16.mxu1 %v1530_v40  ;;  %v1526_v12 = vmul.f32 %v1518_v61, %v1462_v25  ;;  %v3668_v40 = vld [vmem:[#allocation8 + $0x13c] ss:$12 sps:$4 sm:$0xff]   ;;  %v3672_v61 = vld [vmem:[#allocation8 + $0x124] ss:$12 sps:$4 sm:$0xff]  }
 0xa66   :  { %v3819_v44 = vpop.eup %3818  ;;  %1662 = vmatmul.mubr.bf16.vlgmr.msra.gmra.mxu1 %v1529_v41  ;;  %v1519_v13 = vadd.f32 1.0, %v3817_v43  ;;  %v1525_v5 = vmul.f32 %v1517_v46, %v1461_v4  ;;  %v3669_v41 = vld [vmem:[#allocation8 + $0x170] ss:$12 sps:$4 sm:$0xff]   ;;  %v3666_v43 = vld [vmem:[#allocation8 + $0x138] ss:$12 sps:$4 sm:$0xff]  }
 0xa67   :  { %v1520_v8 = vadd.f32 1.0, %v3819_v44  ;;  %3435 = vmatprep.subr.bf16.mxu1 %v3669_v41  ;;  %v3673_v44 = vld [vmem:[#allocation8 + $0x158] ss:$12 sps:$4 sm:$0xff]   ;;  %v3674_v25 = vld [vmem:[#allocation8 + $0x108] ss:$12 sps:$4 sm:$0xff]  }
 0xa68   :  { %v1527_v7 = vmul.f32 %v1519_v13, %v1463_v20  ;;  %3436 = vmatpush3.bf16.msra.mxu1 %v3669_v41  ;;  %v3670_v20 = vld [vmem:[#allocation8 + $0x120] ss:$12 sps:$4 sm:$0xff]   ;;  %v3678_v4 = vld [vmem:[#allocation8 + $0xf0] ss:$12 sps:$4 sm:$0xff]  }
 0xa69   :  { %v1528_v28 = vmul.f32 %v1520_v8, %v1464_v47  ;;  %3437 = vmatprep.subr.bf16.mxu1 %v3673_v44  ;;  %v3676_v46 = vld [vmem:[#allocation8 + $0x10c] ss:$12 sps:$4 sm:$0xff]   ;;  %v3680_v47 = vld [vmem:[#allocation8 + $0xf4] ss:$12 sps:$4 sm:$0xff]  }
 0xa6a   :  { %v1531_v11 = vpack.c.bf16 %v1527_v7, %v1525_v5  ;;  %v3677_v13 = vld [vmem:[#allocation8 + $0x140] ss:$12 sps:$4 sm:$0xff]   ;;  %v3681_v8 = vld [vmem:[#allocation8 + $0x128] ss:$12 sps:$4 sm:$0xff]   ;;  %v3688_v5 = vld [vmem:[#allocation8 + $0xc4] ss:$12 sps:$4 sm:$0xff]  }
 0xa6b   :  { %v1532_v53 = vpack.c.bf16 %v1528_v28, %v1526_v12  ;;  %v3684_v7 = vld [vmem:[#allocation8 + $0xdc] ss:$12 sps:$4 sm:$0xff]   ;;  %v3682_v28 = vld [vmem:[#allocation8 + $0xd8] ss:$12 sps:$4 sm:$0xff]  }
 0xa6c   :  { %3438 = vmatpush3.bf16.msra.mxu1 %v3673_v44  ;;  %v3685_v12 = vld [vmem:[#allocation8 + $0x110] ss:$12 sps:$4 sm:$0xff]  }
 0xa6d   :  { %1669 = vmatprep.mubr.bf16.mxu1 %v1532_v53  ;;  %3439 = vmatprep.subr.bf16.mxu1 %v3677_v13  ;;  %v3689_v53 = vld [vmem:[#allocation8 + $0xf8] ss:$12 sps:$4 sm:$0xff]  }
 0xa6e   :  { %1670 = vmatmul.mubr.bf16.gmra.mxu1 %v1531_v11  ;;  %v3686_v11 = vld [vmem:[#allocation8 + $0xc0] ss:$12 sps:$4 sm:$0xff]  }
 0xa70   :  { %3440 = vmatpush3.bf16.msra.mxu1 %v3677_v13 }
 0xa71   :  { %3441 = vmatprep.subr.bf16.mxu1 %v3681_v8 }
 0xa74   :  { %3442 = vmatpush3.bf16.msra.mxu1 %v3681_v8 }
 0xa75   :  { %3443 = vmatprep.subr.bf16.mxu1 %v3685_v12 }
 0xa78   :  { %3444 = vmatpush3.bf16.msra.mxu1 %v3685_v12 }
 0xa79   :  { %3445 = vmatprep.subr.bf16.mxu1 %v3689_v53 }
 0xa7c   :  { %3446 = vmatpush3.bf16.msra.mxu1 %v3689_v53 }
 0xb26   :  { %v3269_v48 = vpop.f32.mrf.mxu1 }
 0xb28   :  { %v3270_v54 = vpop.f32.mrf.mxu1 }
 0xb29   :  { %v3271_v49 = vadd.f32 %v3270_v54, %v3269_v48  ;;  %v3690_v48 = vld [vmem:[#allocation8 + $0xe0] ss:$12 sps:$4 sm:$0xff]  }
 0xb2a   :  { %v3272_v56 = vpop.f32.mrf.mxu1  ;;  %3447 = vmatprep.subr.bf16.mxu1 %v3690_v48 }
 0xb2b   :  { %v1664_v58 = vadd.f32 %v3271_v49, %v398_v55  ;;  %3448 = vmatpush3.bf16.msra.mxu1 %v3690_v48 }
 0xb2c   :  { %v3273_v59 = vpop.f32.mrf.mxu1 }
 0xb2d   :  { %v3274_v38 = vadd.f32 %v3273_v59, %v3272_v56  ;;  %v1678_v52 = vadd.f32 %v1664_v58, %v4359_v45  ;;  %v3660_v45 = vld [vmem:[#allocation8 + $0x168] ss:$12 sps:$4 sm:$0xff]  }
 0xb2e   :  { %v3275_v60 = vpop.f32.mrf.mxu1  ;;  %1881 = vmatpush1.bf16.msra.mxu0 %v3660_v45 }
 0xb2f   :  { %v1667_v33 = vadd.f32 %v3274_v38, %v398_v55  ;;  %1682 = vadd.xlane.f32.xlu0 %v1678_v52  ;;  %1882 = vmatprep.subr.bf16.mxu0 %v3665_v57 }
 0xb30   :  { %v3276_v62 = vpop.f32.mrf.mxu1 }
 0xb31   :  { %v3277_v63 = vadd.f32 %v3276_v62, %v3275_v60  ;;  %v1679_v42 = vadd.f32 %v1667_v33, %v4361_v0 }
 0xb32   :  { %v3278_v1 = vpop.f32.mrf.mxu1  ;;  %1883 = vmatpush1.bf16.msra.mxu0 %v3663_v36 }
 0xb33   :  { %v1672_v2 = vadd.f32 %v3277_v63, %v398_v55  ;;  %1684 = vadd.xlane.f32.xlu1 %v1679_v42  ;;  %1884 = vmatprep.subr.bf16.mxu0 %v3668_v40 }
 0xb34   :  { %v3279_v37 = vpop.f32.mrf.mxu1 }
 0xb35   :  { %v3280_v3 = vadd.f32 %v3279_v37, %v3278_v1  ;;  %v1680_v6 = vadd.f32 %v1672_v2, %v4368_v50  ;;  %v399_v37 = vld [vmem:[#allocation7 + $0x18] ss:$0 sm:$0xff] }
 0xb36   :  { %1885 = vmatpush1.bf16.msra.mxu0 %v3666_v43 }
 0xb37   :  { %v1675_v9 = vadd.f32 %v3280_v3, %v398_v55  ;;  %1686 = vadd.xlane.f32.xlu0 %v1680_v6  ;;  %1886 = vmatprep.subr.bf16.mxu0 %v3672_v61  ;;  %v3691_v55 = vld [vmem:[#allocation8 + $0xc8] ss:$12 sps:$4 sm:$0xff]  }
 0xb38   :  { %3449 = vmatprep.subr.bf16.mxu1 %v3691_v55 }
 0xb39   :  { %v1681_v10 = vadd.f32 %v1675_v9, %v4370_v51  ;;  %3450 = vmatpush3.bf16.msra.mxu1 %v3691_v55 }
 0xb3a   :  { %1887 = vmatpush1.bf16.msra.mxu0 %v3670_v20 }
 0xb3b   :  { %1688 = vadd.xlane.f32.xlu1 %v1681_v10  ;;  %1888 = vmatprep.subr.bf16.mxu0 %v3676_v46 }
 0xb3e   :  { %1889 = vmatpush1.bf16.msra.mxu0 %v3674_v25 }
 0xb3f   :  { %1890 = vmatprep.subr.bf16.mxu0 %v3680_v47 }
 0xb42   :  { %1891 = vmatpush1.bf16.msra.mxu0 %v3678_v4 }
 0xb43   :  { %1892 = vmatprep.subr.bf16.mxu0 %v3684_v7 }
 0xb46   :  { %1893 = vmatpush1.bf16.msra.mxu0 %v3682_v28 }
 0xb47   :  { %1894 = vmatprep.subr.bf16.mxu0 %v3688_v5 }
 0xb4a   :  { %1895 = vmatpush1.bf16.msra.mxu0 %v3686_v11 }
 0xbb8   :  { %v1683_v17 = vpop.xlane.xlu0 %1682 }
 0xbb9   :  { %v1690_v18 = vmul.f32 0.0078125, %v1683_v17 }
 0xbbb   :  { %v4409_v21 = vsub.f32 %v1678_v52, %v1690_v18 }
 0xbbc   :  { %v1685_v0 = vpop.xlane.xlu1 %1684 }
 0xbbd   :  { %v1691_v22 = vmul.f32 0.0078125, %v1685_v0  ;;  %v1698_v23 = vmul.f32 %v4409_v21, %v4409_v21 }
 0xbbf   :  { %v4413_v24 = vsub.f32 %v1679_v42, %v1691_v22  ;;  %1702 = vadd.xlane.f32.xlu0 %v1698_v23 }
 0xbc0   :  { %v1687_v50 = vpop.xlane.xlu0 %1686 }
 0xbc1   :  { %v1692_v26 = vmul.f32 0.0078125, %v1687_v50  ;;  %v1699_v51 = vmul.f32 %v4413_v24, %v4413_v24 }
 0xbc3   :  { %v4417_v27 = vsub.f32 %v1680_v6, %v1692_v26  ;;  %1704 = vadd.xlane.f32.xlu1 %v1699_v51 }
 0xbc4   :  { %v1689_v29 = vpop.xlane.xlu1 %1688 }
 0xbc5   :  { %v1693_v30 = vmul.f32 0.0078125, %v1689_v29  ;;  %v1700_v32 = vmul.f32 %v4417_v27, %v4417_v27 }
 0xbc7   :  { %v4421_v34 = vsub.f32 %v1681_v10, %v1693_v30  ;;  %1706 = vadd.xlane.f32.xlu0 %v1700_v32  ;;  %v400_v10 = vld [vmem:[#allocation7 + $0x19] ss:$0 sm:$0xff]  ;;  %v402_v30 = vld [vmem:[#allocation7 + $0x1a] ss:$8 sm:$0x7] }
 0xbc8   :  { %v1740_v32 = vrot.slane %v402_v30, %v4249_v15  ;;  %v1748_v44 = vrot.slane %v402_v30, %v486_v19  ;;  %v1744_v13 = vrot.slane %v402_v30, %v4258_v31 }
 0xbc9   :  { %v1701_v35 = vmul.f32 %v4421_v34, %v4421_v34 }
 0xbcb   :  { %1708 = vadd.xlane.f32.xlu1 %v1701_v35 }
 0xc48   :  { %v1703_v54 = vpop.xlane.xlu0 %1702 }
 0xc49   :  { %v1710_v49 = vmul.f32 0.0078125, %v1703_v54 }
 0xc4b   :  { %v1714_v56 = vadd.f32 1e-12, %v1710_v49 }
 0xc4c   :  { %v1705_v58 = vpop.xlane.xlu1 %1704 }
 0xc4d   :  { %3820 = vrsqrt.f32 %v1714_v56  ;;  %v1711_v59 = vmul.f32 0.0078125, %v1705_v58 }
 0xc4f   :  { %v1715_v38 = vadd.f32 1e-12, %v1711_v59 }
 0xc50   :  { %v1707_v52 = vpop.xlane.xlu0 %1706 }
 0xc51   :  { %3822 = vrsqrt.f32 %v1715_v38  ;;  %v1712_v60 = vmul.f32 0.0078125, %v1707_v52 }
 0xc53   :  { %v1716_v33 = vadd.f32 1e-12, %v1712_v60 }
 0xc54   :  { %v1709_v62 = vpop.xlane.xlu1 %1708 }
 0xc55   :  { %3824 = vrsqrt.f32 %v1716_v33  ;;  %v1713_v63 = vmul.f32 0.0078125, %v1709_v62 }
 0xc57   :  { %v1717_v42 = vadd.f32 1e-12, %v1713_v63 }
 0xc59   :  { %3826 = vrsqrt.f32 %v1717_v42 }
 0xc5a   :  { %v3821_v1 = vpop.eup %3820 }
 0xc5b   :  { %v1722_v2 = vmul.f32 %v3821_v1, %v4409_v21  ;;  %v4465_v1 = vld [vmem:[#allocation5] sm:$0xff] }
 0xc5d   :  { %v1726_v9 = vmul.f32 %v1722_v2, %v399_v37 }
 0xc5e   :  { %v3823_v3 = vpop.eup %3822 }
 0xc5f   :  { %v1723_v6 = vmul.f32 %v3823_v3, %v4413_v24  ;;  %v4427_v17 = vadd.f32 %v1726_v9, %v400_v10 }
 0xc61   :  { %v1727_v45 = vmul.f32 %v1723_v6, %v399_v37 }
 0xc62   :  { %v3825_v16 = vpop.eup %3824 }
 0xc63   :  { %v1731_v18 = vadd.f32 %v1727_v45, %v400_v10  ;;  %v1724_v0 = vmul.f32 %v3825_v16, %v4417_v27  ;;  %v4472_v16 = vld [vmem:[#allocation5 + $0x8] sm:$0xff] }
 0xc65   :  { %v1734_v22 = vpack.c.bf16 %v1731_v18, %v4427_v17  ;;  %v1728_v50 = vmul.f32 %v1724_v0, %v399_v37 }
 0xc66   :  { %v3827_v23 = vpop.eup %3826 }
 0xc67   :  { %1913 = vmatmul.mubr.bf16.vlgmr.msra.gmra.mxu0 %v1734_v22  ;;  %3451 = vmatprep.mubr.bf16.mxu1 %v1734_v22  ;;  %v1725_v21 = vmul.f32 %v3827_v23, %v4421_v34  ;;  %v4433_v26 = vadd.f32 %v1728_v50, %v400_v10  ;;  %v4477_v23 = vld [vmem:[#allocation5 + $0x18] sm:$0xff] }
 0xc68   :  { %1922 = vmatprep.mubr.bf16.mxu0 %v4105_v39 }
 0xc69   :  { %v1729_v24 = vmul.f32 %v1725_v21, %v399_v37 }
 0xc6b   :  { %v1733_v51 = vadd.f32 %v1729_v24, %v400_v10  ;;  %v4469_v10 = vld [vmem:[#allocation5 + $0x10] sm:$0xff] }
 0xc6d   :  { %v1735_v29 = vpack.c.bf16 %v1733_v51, %v4433_v26 }
 0xc6f   :  { %1923 = vmatmul.mubr.bf16.gmra.mxu0 %v1735_v29  ;;  %3452 = vmatmul.mubr.bf16.vlgmr.msra.gmra.mxu1 %v1735_v29 }
 0xd27   :  { %v1914_v27 = vpop.f32.mrf.mxu0 }
 0xd28   :  { %v1915_v36 = vadd.f32 %v1914_v27, %v1740_v32 }
 0xd29   :  { %v1916_v35 = vpop.f32.mrf.mxu0 }
 0xd2a   :  { %v1917_v48 = vadd.f32 %v1916_v35, %v1744_v13 }
 0xd2b   :  { %v1918_v57 = vpop.f32.mrf.mxu0 }
 0xd2c   :  { %v1919_v40 = vadd.f32 %v1918_v57, %v1740_v32 }
 0xd2d   :  { %v1920_v34 = vpop.f32.mrf.mxu0 }
 0xd2e   :  { %v4437_v41 = vpack.c.bf16 %v1919_v40, %v1915_v36  ;;  %v1921_v7 = vadd.f32 %v1920_v34, %v1744_v13 }
 0xd2f   :  { %v1924_v43 = vpop.f32.mrf.mxu0  ;;  %v3453_v61 = vpop.f32.mrf.mxu1 }
 0xd30   :  { %3459 = vmatprep.mubr.msk.bf16.mxu0 %vm727_vm0, %v4437_v41  ;;  %v1976_v8 = vadd.f32 %v3453_v61, %v1748_v44  ;;  %v4452_v49 = vpack.c.bf16 %v1921_v7, %v1917_v48  ;;  %v1925_v38 = vadd.f32 %v1924_v43, %v1740_v32 }
 0xd31   :  { %v1926_v20 = vpop.f32.mrf.mxu0  ;;  %v1967_v46 = vpop.f32.mrf.mxu1 }
 0xd32   :  { %v1927_v12 = vadd.f32 %v1926_v20, %v1744_v13  ;;  %v1968_v53 = vadd.f32 %v1967_v46, %v1748_v44  ;;  %v1995_v58 = vsel %vm727_vm0, %v4452_v49, 0 }
 0xd33   :  { %v1928_v25 = vpop.f32.mrf.mxu0  ;;  %v3454_v47 = vpop.f32.mrf.mxu1 }
 0xd34   :  { %v1979_v4 = vadd.f32 %v3454_v47, %v1748_v44  ;;  %v1929_v59 = vadd.f32 %v1928_v25, %v1740_v32 }
 0xd35   :  { %v1930_v28 = vpop.f32.mrf.mxu0  ;;  %v1970_v5 = vpop.f32.mrf.mxu1 }
 0xd36   :  { %v4444_v11 = vpack.c.bf16 %v1979_v4, %v1976_v8  ;;  %v1931_v14 = vadd.f32 %v1930_v28, %v1744_v13  ;;  %v1971_v19 = vadd.f32 %v1970_v5, %v1748_v44  ;;  %v1985_v52 = vpack.c.bf16 %v1929_v59, %v1925_v38 }
 0xd38   :  { %v4446_v55 = vpack.c.bf16 %v1931_v14, %v1927_v12  ;;  %v4448_v54 = vpack.c.bf16 %v1971_v19, %v1968_v53  ;;  %3463 = vmatprep.subr.bf16.mxu1 %v4444_v11 }
 0xd39   :  { %3464 = vmatpush3.bf16.msra.mxu1 %v4444_v11 }
 0xd3a   :  { %3555 = vmatprep.subr.msk.bf16.mxu0 %vm727_vm0, %v4446_v55  ;;  %3465 = vmatprep.subr.bf16.mxu1 %v4448_v54  ;;  %v1998_v56 = vsel %vm727_vm0, %v4446_v55, 0 }
 0xd3b   :  { %3456 = vmatpush3.bf16.xpose.msra.mxu0 %v1998_v56 }
 0xd3c   :  { %3556 = vmatprep.subr.msk.bf16.mxu0 %vm727_vm0, %v4452_v49 }
 0xd3d   :  { %3466 = vmatpush3.bf16.msra.mxu1 %v4448_v54 }
 0xd43   :  { %3458 = vmatpush3.bf16.xpose.msra.mxu0 %v1995_v58 }
 0xd4a   :  { %3460 = vmatmul.mubr.msk.bf16.vlgmr.msra.gmra.mxu0 %vm727_vm0, %v1985_v52 }
 0xe0a   :  { %v3461_v60 = vpop.f32.mrf.mxu0 }
 0xe0b   :  { %v2051_v62 = vmul.f32 0.125, %v3461_v60 }
 0xe0c   :  { %v2034_v33 = vpop.f32.mrf.mxu0 }
 0xe0d   :  { %v2049_v63 = vmul.f32 0.125, %v2034_v33  ;;  %v2055_v45 = vadd.f32 %v4469_v10, %v2051_v62  ;;  %v3692_v33 = vld [vmem:[#allocation10 + $0x58] sm:$0xff]  }
 0xe0e   :  { %v3462_v42 = vpop.f32.mrf.mxu0 }
 0xe0f   :  { %v2053_v2 = vadd.f32 %v4465_v1, %v2049_v63  ;;  %v2052_v3 = vmul.f32 0.125, %v3462_v42  ;;  %v2063_v0 = vsel %vm797_vm1, %v2055_v45, -inf  ;;  %v3693_v63 = vld [vmem:[#allocation10 + $0x50] sm:$0xff]  }
 0xe10   :  { %v2037_v37 = vpop.f32.mrf.mxu0 }
 0xe11   :  { %v2050_v6 = vmul.f32 0.125, %v2037_v37  ;;  %v2057_v9 = vsel %vm797_vm1, %v2053_v2, -inf  ;;  %v2056_v21 = vadd.f32 %v4477_v23, %v2052_v3  ;;  %v3695_v37 = vld [vmem:[#allocation10 + $0x40] sm:$0xff]  }
 0xe12   :  { %2058 = vmax.xlane.f32.xlu0 %v2057_v9 }
 0xe13   :  { %v2054_v18 = vadd.f32 %v4472_v16, %v2050_v6  ;;  %v2066_v50 = vsel %vm797_vm1, %v2056_v21, -inf }
 0xe15   :  { %v2060_v22 = vsel %vm797_vm1, %v2054_v18, -inf }
 0xe16   :  { %2064 = vmax.xlane.f32.xlu0 %v2063_v0  ;;  %2061 = vmax.xlane.f32.xlu1 %v2060_v22 }
 0xe1a   :  { %2067 = vmax.xlane.f32.xlu1 %v2066_v50 }
 0xe9b   :  { %v2059_v24 = vpop.xlane.xlu0 %2058 }
 0xe9c   :  { %v2069_v51 = vsub.f32 %v2053_v2, %v2059_v24  ;;  %v3694_v2 = vld [vmem:[#allocation10 + $0x48] sm:$0xff]  }
 0xe9e   :  { %v2073_v35 = vmul.f32 1.442695, %v2069_v51 }
 0xe9f   :  { %v2065_v29 = vpop.xlane.xlu0 %2064  ;;  %v2062_v30 = vpop.xlane.xlu1 %2061 }
 0xea0   :  { %v2071_v27 = vsub.f32 %v2055_v45, %v2065_v29  ;;  %v2070_v32 = vsub.f32 %v2054_v18, %v2062_v30 }
 0xea2   :  { %v2077_v57 = vmul.f32 1.442695, %v2071_v27  ;;  %v2075_v36 = vmul.f32 1.442695, %v2070_v32 }
 0xea3   :  { %v2068_v40 = vpop.xlane.xlu1 %2067 }
 0xea4   :  { %3828 = vpow2.f32 %v2077_v57  ;;  %v2072_v34 = vsub.f32 %v2056_v21, %v2068_v40 }
 0xea5   :  { %3830 = vpow2.f32 %v2075_v36 }
 0xea6   :  { %3832 = vpow2.f32 %v2073_v35  ;;  %v2079_v43 = vmul.f32 1.442695, %v2072_v34 }
 0xea8   :  { %3834 = vpow2.f32 %v2079_v43 }
 0xeb1   :  { %v3829_v61 = vpop.eup %3828 }
 0xeb2   :  { %v3831_v44 = vpop.eup %3830  ;;  %v2087_v20 = vsel %vm797_vm1, %v3829_v61, 0.0 }
 0xeb3   :  { %v3833_v46 = vpop.eup %3832  ;;  %2088 = vadd.xlane.f32.xlu0 %v2087_v20  ;;  %v2084_v13 = vsel %vm797_vm1, %v3831_v44, 0.0 }
 0xeb4   :  { %2085 = vadd.xlane.f32.xlu1 %v2084_v13  ;;  %v2081_v47 = vsel %vm797_vm1, %v3833_v46, 0.0 }
 0xeb5   :  { %v3835_v25 = vpop.eup %3834 }
 0xeb6   :  { %v2090_v8 = vsel %vm797_vm1, %v3835_v25, 0.0 }
 0xeb7   :  { %2082 = vadd.xlane.f32.xlu0 %v2081_v47 }
 0xeb8   :  { %2091 = vadd.xlane.f32.xlu1 %v2090_v8 }
 0xec9   :  { %2168 = vrot.lane.b32.xlu1 %v4452_v49, %s4097_s15 }
 0xecd   :  { %2162 = vrot.lane.b32.xlu1 %v4437_v41, %s4097_s15  ;;  %2170 = vrot.lane.b32.xlu0 %v4446_v55, %s4097_s15 }
 0xed1   :  { %2164 = vrot.lane.b32.xlu1 %v1985_v52, %s4097_s15 }
 0xf3c   :  { %v2089_v4 = vpop.xlane.xlu0 %2088 }
 0xf3d   :  { %v2086_v7 = vpop.xlane.xlu1 %2085 }
 0xf3e   :  { %3836 = vrcp.f32 %v2086_v7 }
 0xf3f   :  { %3838 = vrcp.f32 %v2089_v4 }
 0xf40   :  { %v2083_v12 = vpop.xlane.xlu0 %2082 }
 0xf41   :  { %3840 = vrcp.f32 %v2083_v12  ;;  %v2092_v28 = vpop.xlane.xlu1 %2091 }
 0xf42   :  { %3842 = vrcp.f32 %v2092_v28 }
 0xf44   :  { %v2171_v5 = vpop.permute.xlu0 %2170 }
 0xf45   :  { %3557 = vmatprep.subr.msk.bf16.mxu1 %vm727_vm0, %v2171_v5  ;;  %v2169_v41 = vpop.permute.xlu1 %2168  ;;  %v2182_v52 = vsel %vm727_vm0, %v2171_v5, 0 }
 0xf46   :  { %v2179_v62 = vsel %vm727_vm0, %v2169_v41, 0 }
 0xf49   :  { %v2163_v60 = vpop.permute.xlu1 %2162 }
 0xf4b   :  { %v3837_v53 = vpop.eup %3836 }
 0xf4c   :  { %v3839_v14 = vpop.eup %3838  ;;  %v2096_v55 = vmul.f32 %v3837_v53, %v3831_v44 }
 0xf4d   :  { %v2098_v56 = vmul.f32 %v3839_v14, %v3829_v61  ;;  %v2165_v42 = vpop.permute.xlu1 %2164 }
 0xf4e   :  { %v3841_v19 = vpop.eup %3840 }
 0xf4f   :  { %v3843_v48 = vpop.eup %3842  ;;  %v2094_v49 = vmul.f32 %v3841_v19, %v3833_v46 }
 0xf50   :  { %v2100_v58 = vmul.f32 %v3843_v48, %v3835_v25 }
 0xf51   :  { %v2101_v59 = vpack.c.bf16 %v2096_v55, %v2094_v49 }
 0xf52   :  { %v2102_v38 = vpack.c.bf16 %v2100_v58, %v2098_v56 }
 0xf53   :  { %3467 = vmatprep.mubr.msk.bf16.mxu1 %vm797_vm1, %v2101_v59 }
 0xf54   :  { %3468 = vmatmul.mubr.msk.bf16.vlgmr.msra.gmra.mxu1 %vm797_vm1, %v2102_v38 }
 0xf55   :  { %3472 = vmatpush3.bf16.xpose.msra.mxu1 %v2182_v52  ;;  %3475 = vmatprep.mubr.msk.bf16.mxu1 %vm727_vm0, %v2163_v60 }
 0xf56   :  { %3558 = vmatprep.subr.msk.bf16.mxu1 %vm727_vm0, %v2169_v41 }
 0xf5d   :  { %3474 = vmatpush3.bf16.xpose.msra.mxu1 %v2179_v62 }
 0xf5e   :  { %3499 = vmatprep.subr.bf16.mxu1 %v3692_v33 }
 0xf64   :  { %3476 = vmatmul.mubr.msk.bf16.vlgmr.msra.gmra.mxu1 %vm727_vm0, %v2165_v42 }
 0xf65   :  { %3500 = vmatpush3.bf16.msra.mxu1 %v3692_v33  ;;  %v3696_v33 = vld [vmem:[#allocation10 + $0x78] sm:$0xff]  }
 0xf66   :  { %3501 = vmatprep.subr.bf16.mxu1 %v3693_v63 }
 0xf69   :  { %3502 = vmatpush3.bf16.msra.mxu1 %v3693_v63 }
 0xf6a   :  { %3503 = vmatprep.subr.bf16.mxu1 %v3694_v2 }
 0xf6d   :  { %3504 = vmatpush3.bf16.msra.mxu1 %v3694_v2 }
 0xf6e   :  { %3505 = vmatprep.subr.bf16.mxu1 %v3695_v37 }
 0xf71   :  { %3506 = vmatpush3.bf16.msra.mxu1 %v3695_v37 }
0x1014   :  { %v3469_v3 = vpop.f32.mrf.mxu1 }
0x1016   :  { %v2143_v6 = vpop.f32.mrf.mxu1 }
0x1018   :  { %v3470_v9 = vpop.f32.mrf.mxu1 }
0x1019   :  { %v2159_v0 = vpack.c.bf16 %v3470_v9, %v3469_v3 }
0x101a   :  { %v2146_v45 = vpop.f32.mrf.mxu1 }
0x101b   :  { %v2158_v18 = vpack.c.bf16 %v2146_v45, %v2143_v6 }
0x101d   :  { %3507 = vmatprep.mubr.msk.bf16.mxu1 %vm727_vm0, %v2158_v18  ;;  %v3697_v18 = vld [vmem:[#allocation10 + $0x70] sm:$0xff]  }
0x101e   :  { %3508 = vmatmul.mubr.msk.bf16.vlgmr.msra.gmra.mxu1 %vm727_vm0, %v2159_v0  ;;  %v3698_v0 = vld [vmem:[#allocation10 + $0x68] sm:$0xff]  }
0x1024   :  { %v3477_v22 = vpop.f32.mrf.mxu1 }
0x1025   :  { %v2235_v50 = vmul.f32 0.125, %v3477_v22  ;;  %v3699_v22 = vld [vmem:[#allocation10 + $0x60] sm:$0xff]  }
0x1026   :  { %v2218_v21 = vpop.f32.mrf.mxu1 }
0x1027   :  { %v2233_v24 = vmul.f32 0.125, %v2218_v21  ;;  %v2239_v57 = vadd.f32 %v4469_v10, %v2235_v50 }
0x1028   :  { %v3478_v51 = vpop.f32.mrf.mxu1 }
0x1029   :  { %v2237_v29 = vadd.f32 %v4465_v1, %v2233_v24  ;;  %v2236_v27 = vmul.f32 0.125, %v3478_v51  ;;  %v2247_v40 = vsel %vm797_vm1, %v2239_v57, -inf }
0x102a   :  { %v2221_v30 = vpop.f32.mrf.mxu1 }
0x102b   :  { %v2234_v32 = vmul.f32 0.125, %v2221_v30  ;;  %v2241_v35 = vsel %vm797_vm1, %v2237_v29, -inf  ;;  %v2240_v43 = vadd.f32 %v4477_v23, %v2236_v27 }
0x102c   :  { %2242 = vmax.xlane.f32.xlu0 %v2241_v35 }
0x102d   :  { %v2238_v36 = vadd.f32 %v4472_v16, %v2234_v32  ;;  %v2250_v1 = vsel %vm797_vm1, %v2240_v43, -inf }
0x102f   :  { %v2244_v34 = vsel %vm797_vm1, %v2238_v36, -inf }
0x1030   :  { %2248 = vmax.xlane.f32.xlu0 %v2247_v40  ;;  %2245 = vmax.xlane.f32.xlu1 %v2244_v34 }
0x1034   :  { %2251 = vmax.xlane.f32.xlu0 %v2250_v1 }
0x10b5   :  { %v2243_v61 = vpop.xlane.xlu0 %2242 }
0x10b6   :  { %v2253_v44 = vsub.f32 %v2237_v29, %v2243_v61 }
0x10b8   :  { %v2257_v10 = vmul.f32 1.442695, %v2253_v44 }
0x10b9   :  { %v2249_v20 = vpop.xlane.xlu0 %2248  ;;  %v2246_v46 = vpop.xlane.xlu1 %2245 }
0x10ba   :  { %v2255_v13 = vsub.f32 %v2239_v57, %v2249_v20  ;;  %v2254_v47 = vsub.f32 %v2238_v36, %v2246_v46  ;;  %v403_v57 = vld [vmem:[#allocation7 + $0x1b] ss:$0 sm:$0xff]  ;;  %v3702_v46 = vld [vmem:[#allocation11 + $0xf4] ss:$8 sps:$4 sm:$0xff]  }
0x10bb   :  { %v3700_v20 = vld [vmem:[#allocation11 + $0xf0] ss:$8 sps:$4 sm:$0xff]  }
0x10bc   :  { %v2261_v25 = vmul.f32 1.442695, %v2255_v13  ;;  %v2259_v4 = vmul.f32 1.442695, %v2254_v47 }
0x10bd   :  { %v2252_v16 = vpop.xlane.xlu0 %2251 }
0x10be   :  { %3844 = vpow2.f32 %v2261_v25  ;;  %v2256_v8 = vsub.f32 %v2240_v43, %v2252_v16 }
0x10bf   :  { %3846 = vpow2.f32 %v2257_v10 }
0x10c0   :  { %v2263_v7 = vmul.f32 1.442695, %v2256_v8 }
0x10c2   :  { %3848 = vpow2.f32 %v2263_v7  ;;  %v3708_v7 = vld [vmem:[#allocation11 + $0xd4] ss:$8 sps:$4 sm:$0xff]  }
0x10c3   :  { %3850 = vpow2.f32 %v2259_v4  ;;  %v3703_v4 = vld [vmem:[#allocation11 + $0xe0] ss:$8 sps:$4 sm:$0xff]  }
0x10cb   :  { %v3845_v23 = vpop.eup %3844 }
0x10cc   :  { %v2271_v12 = vsel %vm797_vm1, %v3845_v23, 0.0  ;;  %v3847_v28 = vpop.eup %3846 }
0x10cd   :  { %2272 = vadd.xlane.f32.xlu0 %v2271_v12  ;;  %v2265_v53 = vsel %vm797_vm1, %v3847_v28, 0.0  ;;  %v3711_v12 = vld [vmem:[#allocation11 + $0xc4] ss:$8 sps:$4 sm:$0xff]  }
0x10cf   :  { %v3849_v5 = vpop.eup %3848 }
0x10d0   :  { %v2274_v14 = vsel %vm797_vm1, %v3849_v5, 0.0  ;;  %v3851_v19 = vpop.eup %3850 }
0x10d1   :  { %2266 = vadd.xlane.f32.xlu0 %v2265_v53  ;;  %2275 = vadd.xlane.f32.xlu1 %v2274_v14  ;;  %v2268_v41 = vsel %vm797_vm1, %v3851_v19, 0.0  ;;  %v3712_v53 = vld [vmem:[#allocation11 + $0xb0] ss:$8 sps:$4 sm:$0xff]   ;;  %v3717_v14 = vld [vmem:[#allocation11 + $0xa4] ss:$8 sps:$4 sm:$0xff]  }
0x10d5   :  { %2269 = vadd.xlane.f32.xlu1 %v2268_v41  ;;  %v3718_v41 = vld [vmem:[#allocation11 + $0x90] ss:$8 sps:$4 sm:$0xff]  }
0x10de   :  { %v3509_v48 = vpop.f32.mrf.mxu1 }
0x10e0   :  { %v2493_v49 = vpop.f32.mrf.mxu1 }
0x10e2   :  { %v3510_v55 = vpop.f32.mrf.mxu1 }
0x10e3   :  { %v3721_v55 = vld [vmem:[#allocation11 + $0x80] ss:$8 sps:$4 sm:$0xff]  }
0x10e4   :  { %v2496_v56 = vpop.f32.mrf.mxu1 }
0x10e6   :  { %2289 = vrot.lane.b32.xlu1 %v4448_v54, %s4097_s15 }
0x10e7   :  { %2291 = vrot.lane.b32.xlu0 %v4444_v11, %s4097_s15  ;;  %s4108_s15 = smov [#allocation17]  }
0x10e8   :  { %s3034_s16 = sshll.u32 %s4108_s15, 4  ;;  %s3035_s16 = int_to_ptr.vmem [resolvable:$true] %s3034_s16 }
0x10e9   :  { %s4056_s6 = scalar_lea.vmem %s3035_s16, 32  ;;  %p4061_p4 = scmp.lt.s32.totalorder %s3035_s16, %s3035_s16 }
0x10ea   :  { %p4057_p3 = scmp.ne.s32.totalorder %s3035_s16, %s4056_s6  ;;  %p4062_p5 = scmp.lt.s32.totalorder %s4056_s6, %s4056_s6 }
0x10ec   :  { %p4063_p6 = por %p4062_p5, %p4061_p4 }
0x10ee   :  { %p4064_p7 = pnand %p4063_p6, %p4057_p3 }
0x1156   :  { %v2273_v58 = vpop.xlane.xlu0 %2272 }
0x115a   :  { %v2267_v59 = vpop.xlane.xlu0 %2266  ;;  %v2276_v38 = vpop.xlane.xlu1 %2275 }
0x115b   :  { %3852 = vrcp.f32 %v2276_v38 }
0x115c   :  { %3854 = vrcp.f32 %v2267_v59 }
0x115d   :  { %3856 = vrcp.f32 %v2273_v58 }
0x115e   :  { %v2292_v52 = vpop.permute.xlu0 %2291  ;;  %v2270_v60 = vpop.xlane.xlu1 %2269 }
0x115f   :  { %3858 = vrcp.f32 %v2270_v60  ;;  %3479 = vmatprep.subr.bf16.mxu0 %v2292_v52 }
0x1160   :  { %3480 = vmatpush3.bf16.msra.mxu0 %v2292_v52 }
0x1162   :  { %v2290_v62 = vpop.permute.xlu1 %2289 }
0x1163   :  { %3481 = vmatprep.subr.bf16.mxu0 %v2290_v62 }
0x1164   :  { %3482 = vmatpush3.bf16.msra.mxu0 %v2290_v62  ;;  %v404_v62 = vld [vmem:[#allocation7 + $0x1c] ss:$0 sm:$0xff] }
0x1165   :  { %3487 = vmatprep.subr.bf16.mxu0 %v3696_v33 }
0x1168   :  { %v3853_v54 = vpop.eup %3852 }
0x1169   :  { %v3855_v63 = vpop.eup %3854  ;;  %v2284_v2 = vmul.f32 %v3853_v54, %v3849_v5  ;;  %v3714_v5 = vld [vmem:[#allocation11 + $0xb4] ss:$8 sps:$4 sm:$0xff]  }
0x116a   :  { %v3857_v42 = vpop.eup %3856  ;;  %v2278_v37 = vmul.f32 %v3855_v63, %v3847_v28  ;;  %v3709_v28 = vld [vmem:[#allocation11 + $0xc0] ss:$8 sps:$4 sm:$0xff]  }
0x116b   :  { %v2282_v6 = vmul.f32 %v3857_v42, %v3845_v23  ;;  %v3706_v23 = vld [vmem:[#allocation11 + $0xd0] ss:$8 sps:$4 sm:$0xff]   ;;  %v405_v42 = vld [vmem:[#allocation7 + $0x1d] ss:$0 sm:$0xff] }
0x116c   :  { %v3859_v11 = vpop.eup %3858 }
0x116d   :  { %v2280_v3 = vmul.f32 %v3859_v11, %v3851_v19  ;;  %v2286_v45 = vpack.c.bf16 %v2284_v2, %v2282_v6  ;;  %v3715_v19 = vld [vmem:[#allocation11 + $0xa0] ss:$8 sps:$4 sm:$0xff]  }
0x116f   :  { %v2285_v9 = vpack.c.bf16 %v2280_v3, %v2278_v37 }
0x1171   :  { %3483 = vmatprep.mubr.msk.bf16.mxu0 %vm797_vm1, %v2285_v9 }
0x1172   :  { %3484 = vmatmul.mubr.msk.bf16.vlgmr.msra.gmra.mxu0 %vm797_vm1, %v2286_v45 }
0x1173   :  { %3488 = vmatpush3.bf16.msra.mxu0 %v3696_v33 }
0x1174   :  { %3489 = vmatprep.subr.bf16.mxu0 %v3697_v18 }
0x1177   :  { %3490 = vmatpush3.bf16.msra.mxu0 %v3697_v18 }
0x1178   :  { %3491 = vmatprep.subr.bf16.mxu0 %v3698_v0 }
0x117b   :  { %3492 = vmatpush3.bf16.msra.mxu0 %v3698_v0  ;;  %v3724_v0 = vld [vmem:[#allocation13 + $0xf8] sm:$0xff]  }
0x117c   :  { %3493 = vmatprep.subr.bf16.mxu0 %v3699_v22  ;;  %3319 = vmatprep.subr.bf16.mxu1 %v3724_v0  ;;  %v3744_v0 = vld [vmem:[#allocation14 + $0x18] sm:$0xff]  }
0x117f   :  { %3494 = vmatpush3.bf16.msra.mxu0 %v3699_v22  ;;  %v3725_v22 = vld [vmem:[#allocation13 + $0xb8] sm:$0xff]  }
0x1180   :  { %2633 = vmatprep.subr.bf16.mxu0 %v3702_v46  ;;  %3320 = vmatpush3.bf16.msra.mxu1 %v3725_v22  ;;  %v3745_v22 = vld [vmem:[#allocation14 + $0x10] sm:$0xff]  }
0x1232   :  { %v3485_v21 = vpop.f32.mrf.mxu0 }
0x1234   :  { %v2335_v50 = vpop.f32.mrf.mxu0 }
0x1236   :  { %v3486_v24 = vpop.f32.mrf.mxu0 }
0x1237   :  { %v2351_v30 = vpack.c.bf16 %v3486_v24, %v3485_v21  ;;  %v3726_v21 = vld [vmem:[#allocation13 + $0xf0] sm:$0xff]   ;;  %v3728_v24 = vld [vmem:[#allocation13 + $0xe8] sm:$0xff]  }
0x1238   :  { %v2338_v51 = vpop.f32.mrf.mxu0  ;;  %3321 = vmatprep.subr.bf16.mxu1 %v3726_v21  ;;  %v3746_v21 = vld [vmem:[#allocation14 + $0x8] sm:$0xff]  }
0x1239   :  { %v2350_v29 = vpack.c.bf16 %v2338_v51, %v2335_v50  ;;  %v3727_v50 = vld [vmem:[#allocation13 + $0xb0] sm:$0xff]   ;;  %v3729_v51 = vld [vmem:[#allocation13 + $0xa8] sm:$0xff]  }
0x123a   :  { %3322 = vmatpush3.bf16.msra.mxu1 %v3727_v50  ;;  %v3747_v50 = vld [vmem:[#allocation14] sm:$0xff]  }
0x123b   :  { %3495 = vmatprep.mubr.msk.bf16.mxu0 %vm727_vm0, %v2350_v29  ;;  %v3730_v29 = vld [vmem:[#allocation13 + $0xe0] sm:$0xff]   ;;  %3323 = vmatprep.subr.bf16.mxu1 %v3728_v24  ;;  %v3748_v24 = vld [vmem:[#allocation16 + $0x38] sm:$0xff]  }
0x123c   :  { %3496 = vmatmul.mubr.msk.bf16.vlgmr.msra.gmra.mxu0 %vm727_vm0, %v2351_v30  ;;  %v3731_v30 = vld [vmem:[#allocation13 + $0xa0] sm:$0xff]  }
0x123d   :  { %2665 = vmatprep.mubr.bf16.mxu0 %v4105_v39  ;;  %2634 = vmatpush1.bf16.msra.mxu0 %v3700_v20 }
0x123e   :  { %3324 = vmatpush3.bf16.msra.mxu1 %v3729_v51  ;;  %v3749_v51 = vld [vmem:[#allocation16 + $0x30] sm:$0xff]  }
0x123f   :  { %3325 = vmatprep.subr.bf16.mxu1 %v3730_v29  ;;  %v3750_v29 = vld [vmem:[#allocation16 + $0x28] sm:$0xff]  }
0x1242   :  { %3326 = vmatpush3.bf16.msra.mxu1 %v3731_v30 }
0x12fc   :  { %v3497_v27 = vpop.f32.mrf.mxu0 }
0x12fd   :  { %v2501_v32 = vadd.f32 %v3509_v48, %v3497_v27  ;;  %v3720_v48 = vld [vmem:[#allocation11 + $0x94] ss:$8 sps:$4 sm:$0xff]  }
0x12fe   :  { %v2416_v35 = vpop.f32.mrf.mxu0  ;;  %v3732_v27 = vld [vmem:[#allocation13 + $0xd8] sm:$0xff]  }
0x12ff   :  { %v2507_v36 = vadd.f32 %v2501_v32, %v4433_v26  ;;  %v2494_v40 = vadd.f32 %v2493_v49, %v2416_v35  ;;  %v3723_v49 = vld [vmem:[#allocation11 + $0x84] ss:$8 sps:$4 sm:$0xff]   ;;  %v3733_v32 = vld [vmem:[#allocation13 + $0x98] sm:$0xff]   ;;  %3327 = vmatprep.subr.bf16.mxu1 %v3732_v27  ;;  %v3734_v35 = vld [vmem:[#allocation13 + $0xd0] sm:$0xff]  }
0x1300   :  { %v3498_v34 = vpop.f32.mrf.mxu0  ;;  %3328 = vmatpush3.bf16.msra.mxu1 %v3733_v32 }
0x1301   :  { %v2506_v43 = vadd.f32 %v2494_v40, %v4427_v17  ;;  %v2509_v1 = vadd.f32 %v2507_v36, %v403_v57  ;;  %v3705_v17 = vld [vmem:[#allocation11 + $0xe4] ss:$8 sps:$4 sm:$0xff]   ;;  %3329 = vmatprep.subr.bf16.mxu1 %v3734_v35 }
0x1302   :  { %v2419_v61 = vpop.f32.mrf.mxu0  ;;  %2635 = vmatprep.subr.bf16.mxu0 %v3705_v17  ;;  %v3736_v36 = vld [vmem:[#allocation13 + $0xc8] sm:$0xff]   ;;  %v3738_v34 = vld [vmem:[#allocation13 + $0xc0] sm:$0xff]  }
0x1303   :  { %2512 = vadd.xlane.f32.xlu1 %v2509_v1  ;;  %v2508_v44 = vadd.f32 %v2506_v43, %v403_v57  ;;  %2636 = vmatpush1.bf16.msra.mxu0 %v3703_v4  ;;  %v3735_v57 = vld [vmem:[#allocation13 + $0x90] sm:$0xff]   ;;  %v3737_v40 = vld [vmem:[#allocation13 + $0x88] sm:$0xff]   ;;  %v3739_v43 = vld [vmem:[#allocation13 + $0x80] sm:$0xff]  }
0x1304   :  { %2637 = vmatprep.subr.bf16.mxu0 %v3708_v7  ;;  %3330 = vmatpush3.bf16.msra.mxu1 %v3735_v57  ;;  %v409_v57 = vld [vmem:[#allocation7 + $0x30] ss:$0 sm:$0xff] }
0x1305   :  { %2510 = vadd.xlane.f32.xlu0 %v2508_v44  ;;  %3331 = vmatprep.subr.bf16.mxu1 %v3736_v36 }
0x1307   :  { %2638 = vmatpush1.bf16.msra.mxu0 %v3706_v23 }
0x1308   :  { %2639 = vmatprep.subr.bf16.mxu0 %v3711_v12  ;;  %3332 = vmatpush3.bf16.msra.mxu1 %v3737_v40  ;;  %v410_v40 = vld [vmem:[#allocation7 + $0x31] ss:$0 sm:$0xff] }
0x1309   :  { %3333 = vmatprep.subr.bf16.mxu1 %v3738_v34 }
0x130b   :  { %2640 = vmatpush1.bf16.msra.mxu0 %v3709_v28 }
0x130c   :  { %2641 = vmatprep.subr.bf16.mxu0 %v3714_v5  ;;  %3334 = vmatpush3.bf16.msra.mxu1 %v3739_v43 }
0x130f   :  { %2642 = vmatpush1.bf16.msra.mxu0 %v3712_v53 }
0x1310   :  { %2643 = vmatprep.subr.bf16.mxu0 %v3717_v14 }
0x1313   :  { %2644 = vmatpush1.bf16.msra.mxu0 %v3715_v19 }
0x1314   :  { %2645 = vmatprep.subr.bf16.mxu0 %v3720_v48 }
0x1317   :  { %2646 = vmatpush1.bf16.msra.mxu0 %v3718_v41 }
0x1318   :  { %2647 = vmatprep.subr.bf16.mxu0 %v3723_v49 }
0x131b   :  { %2648 = vmatpush1.bf16.msra.mxu0 %v3721_v55 }
0x138c   :  { %v2513_v39 = vpop.xlane.xlu1 %2512 }
0x138d   :  { %v2515_v13 = vmul.f32 0.0078125, %v2513_v39 }
0x138e   :  { %v2511_v10 = vpop.xlane.xlu0 %2510 }
0x138f   :  { %v2517_v25 = vsub.f32 %v2509_v1, %v2515_v13  ;;  %v2514_v47 = vmul.f32 0.0078125, %v2511_v10  ;;  %v407_v1 = vld [vmem:[#allocation7 + $0x1e] ss:$8 sm:$0x3] }
0x1390   :  { %v2546_v61 = vrot.slane %v407_v1, %v4249_v15 }
0x1391   :  { %v2516_v16 = vsub.f32 %v2508_v44, %v2514_v47  ;;  %v2519_v26 = vmul.f32 %v2517_v25, %v2517_v25  ;;  %v2550_v44 = vrot.slane %v407_v1, %v4258_v31 }
0x1393   :  { %2522 = vadd.xlane.f32.xlu0 %v2519_v26  ;;  %v2518_v8 = vmul.f32 %v2516_v16, %v2516_v16 }
0x1395   :  { %2520 = vadd.xlane.f32.xlu1 %v2518_v8 }
0x141c   :  { %v2523_v56 = vpop.xlane.xlu0 %2522 }
0x141d   :  { %v2525_v58 = vmul.f32 0.0078125, %v2523_v56 }
0x141e   :  { %v2521_v59 = vpop.xlane.xlu1 %2520 }
0x141f   :  { %v2527_v38 = vadd.f32 1e-12, %v2525_v58  ;;  %v2524_v52 = vmul.f32 0.0078125, %v2521_v59  ;;  %v408_v58 = vld [vmem:[#allocation7 + $0x1f] ss:$0 sm:$0xff] }
0x1421   :  { %3860 = vrsqrt.f32 %v2527_v38  ;;  %v2526_v60 = vadd.f32 1e-12, %v2524_v52 }
0x1423   :  { %3862 = vrsqrt.f32 %v2526_v60 }
0x142e   :  { %v3861_v33 = vpop.eup %3860 }
0x142f   :  { %v2531_v54 = vmul.f32 %v3861_v33, %v2517_v25 }
0x1430   :  { %v3863_v63 = vpop.eup %3862 }
0x1431   :  { %v2530_v11 = vmul.f32 %v3863_v63, %v2516_v16  ;;  %v2533_v2 = vmul.f32 %v2531_v54, %v404_v62  ;;  %v3740_v63 = vld [vmem:[#allocation14 + $0x38] sm:$0xff]  }
0x1433   :  { %v2532_v37 = vmul.f32 %v2530_v11, %v404_v62  ;;  %v2535_v3 = vadd.f32 %v2533_v2, %v405_v42  ;;  %v3741_v11 = vld [vmem:[#allocation14 + $0x30] sm:$0xff]  }
0x1435   :  { %v2534_v6 = vadd.f32 %v2532_v37, %v405_v42  ;;  %v2537_v9 = vrot.slane %v2535_v3, 7  ;;  %v4106_v42 = vmov 0.0  }
0x1436   :  { %3511 = vmatprep.subr.bf16.mxu0 %v4106_v42  ;;  %3531 = vmatprep.subr.bf16.mxu1 %v4106_v42 }
0x1437   :  { %v4525_v45 = vsel %vm2539_vm2, %v2534_v6, %v2537_v9 }
0x1438   :  { %v2541_v18 = vpack.c.bf16 %v4525_v45, %v4525_v45 }
0x143a   :  { %2666 = vmatmul.mubr.bf16.vlgmr.msra.gmra.mxu0 %v2541_v18  ;;  %v3743_v18 = vld [vmem:[#allocation14 + $0x20] sm:$0xff]  }
0x143b   :  { %3512 = vmatpush3.bf16.msra.mxu0 %v3740_v63  ;;  %3527 = vmatprep.mubr.msk.bf16.mxu0 %vm4107_vm4, %v4106_v42 }
0x143c   :  { %3513 = vmatprep.subr.bf16.mxu0 %v4106_v42 }
0x143f   :  { %3514 = vmatpush3.bf16.msra.mxu0 %v3741_v11 }
0x1440   :  { %3515 = vmatprep.subr.bf16.mxu0 %v4106_v42 }
0x14fa   :  { %v2667_v20 = vpop.f32.mrf.mxu0 }
0x14fb   :  { %v2668_v46 = vadd.f32 %v2667_v20, %v2546_v61  ;;  %v3751_v61 = vld [vmem:[#allocation16 + $0x20] sm:$0xff]   ;;  %v3753_v20 = vld [vmem:[#allocation16 + $0x10] sm:$0xff]  }
0x14fc   :  { %v2669_v39 = vpop.f32.mrf.mxu0 }
0x14fd   :  { %v2676_v13 = vmul.f32 0.044715, %v2668_v46  ;;  %v2670_v10 = vadd.f32 %v2669_v39, %v2550_v44  ;;  %v2674_v53 = vmul.f32 0.5, %v2668_v46  ;;  %v3752_v44 = vld [vmem:[#allocation16 + $0x18] sm:$0xff]   ;;  %v3755_v39 = vld [vmem:[#allocation16] sm:$0xff]  }
0x14fe   :  { %v2671_v25 = vpop.f32.mrf.mxu0 }
0x14ff   :  { %v2678_v47 = vmul.f32 %v2676_v13, %v2668_v46  ;;  %v2677_v16 = vmul.f32 0.044715, %v2670_v10  ;;  %v2675_v14 = vmul.f32 0.5, %v2670_v10  ;;  %v177_v13 = vld [vmem:[#allocation7 + $0x32] ss:$0 sm:$0xff] }
0x1500   :  { %v2672_v26 = vpop.f32.mrf.mxu0 }
0x1501   :  { %v2680_v8 = vmul.f32 %v2678_v47, %v2668_v46  ;;  %v2679_v17 = vmul.f32 %v2677_v16, %v2670_v10 }
0x1503   :  { %v2682_v4 = vadd.f32 %v2680_v8, %v2668_v46  ;;  %v2681_v7 = vmul.f32 %v2679_v17, %v2670_v10  ;;  %v3754_v46 = vld [vmem:[#allocation16 + $0x8] sm:$0xff]   ;;  %v419_v8 = vld [vmem:[%s4560_s2] sm:$0x3] }
0x1505   :  { %v2684_v23 = vmul.f32 0.7978846, %v2682_v4  ;;  %v2683_v12 = vadd.f32 %v2681_v7, %v2670_v10 }
0x1507   :  { %v2685_v28 = vmul.f32 0.7978846, %v2683_v12  ;;  %3864 = vtanh.f32 %v2684_v23  ;;  %v194_v23 = vld [vmem:[#allocation7 + $0x33] ss:$0 sm:$0xff] }
0x1509   :  { %3866 = vtanh.f32 %v2685_v28 }
0x1514   :  { %v3865_v15 = vpop.eup %3864 }
0x1515   :  { %v2688_v31 = vadd.f32 1.0, %v3865_v15 }
0x1516   :  { %v3867_v5 = vpop.eup %3866 }
0x1517   :  { %v2689_v19 = vadd.f32 1.0, %v3867_v5  ;;  %v2690_v41 = vmul.f32 %v2688_v31, %v2674_v53 }
0x1519   :  { %v2691_v48 = vmul.f32 %v2689_v19, %v2675_v14  ;;  %v2692_v55 = vpack.c.bf16 %v2690_v41, %v2690_v41 }
0x151b   :  { %v2693_v49 = vpack.c.bf16 %v2691_v48, %v2691_v48 }
0x151d   :  { %2822 = vmatprep.mubr.bf16.mxu1 %v2693_v49 }
0x151e   :  { %2823 = vmatmul.mubr.bf16.vlgmr.msra.gmra.mxu1 %v2692_v55 }
0x151f   :  { %3547 = vmatprep.mubr.msk.bf16.mxu1 %vm4107_vm4, %v4106_v42  ;;  %3532 = vmatpush3.bf16.msra.mxu1 %v3748_v24 }
0x1520   :  { %3533 = vmatprep.subr.bf16.mxu1 %v4106_v42 }
0x1523   :  { %3534 = vmatpush3.bf16.msra.mxu1 %v3749_v51 }
0x1524   :  { %3535 = vmatprep.subr.bf16.mxu1 %v4106_v42 }
0x1527   :  { %3536 = vmatpush3.bf16.msra.mxu1 %v3750_v29 }
0x1528   :  { %3537 = vmatprep.subr.bf16.mxu1 %v4106_v42 }
0x152b   :  { %3538 = vmatpush3.bf16.msra.mxu1 %v3751_v61 }
0x152c   :  { %3539 = vmatprep.subr.bf16.mxu1 %v4106_v42 }
0x152f   :  { %3540 = vmatpush3.bf16.msra.mxu1 %v3752_v44 }
0x1530   :  { %3541 = vmatprep.subr.bf16.mxu1 %v4106_v42 }
0x1533   :  { %3542 = vmatpush3.bf16.msra.mxu1 %v3753_v20 }
0x1534   :  { %3543 = vmatprep.subr.bf16.mxu1 %v4106_v42 }
0x1537   :  { %3544 = vmatpush3.bf16.msra.mxu1 %v3754_v46 }
0x1538   :  { %3545 = vmatprep.subr.bf16.mxu1 %v4106_v42 }
0x153b   :  { %3546 = vmatpush3.bf16.msra.mxu1 %v3755_v39 }
0x15de   :  { %v3335_v56 = vpop.f32.mrf.mxu1 }
0x15e0   :  { %v3336_v59 = vpop.f32.mrf.mxu1 }
0x15e1   :  { %v3337_v38 = vadd.f32 %v3336_v59, %v3335_v56 }
0x15e2   :  { %v3338_v52 = vpop.f32.mrf.mxu1 }
0x15e3   :  { %v2825_v60 = vadd.f32 %v3337_v38, %v408_v58 }
0x15e4   :  { %v3339_v33 = vpop.f32.mrf.mxu1 }
0x15e5   :  { %v2830_v62 = vadd.f32 %v2825_v60, %v4525_v45  ;;  %v3742_v45 = vld [vmem:[#allocation14 + $0x28] sm:$0xff]  }
0x15e6   :  { %3516 = vmatpush3.bf16.msra.mxu0 %v3742_v45 }
0x15e7   :  { %v2832_v54 = vsel %vm2831_vm3, %v2830_v62, 0.0  ;;  %3517 = vmatprep.subr.bf16.mxu0 %v4106_v42 }
0x15e8   :  { %2833 = vadd.xlane.f32.xlu0 %v2832_v54 }
0x15ea   :  { %3518 = vmatpush3.bf16.msra.mxu0 %v3743_v18 }
0x15eb   :  { %3519 = vmatprep.subr.bf16.mxu0 %v4106_v42 }
0x15ee   :  { %3520 = vmatpush3.bf16.msra.mxu0 %v3744_v0 }
0x15ef   :  { %3521 = vmatprep.subr.bf16.mxu0 %v4106_v42 }
0x15f2   :  { %3522 = vmatpush3.bf16.msra.mxu0 %v3745_v22 }
0x15f3   :  { %3523 = vmatprep.subr.bf16.mxu0 %v4106_v42 }
0x15f6   :  { %3524 = vmatpush3.bf16.msra.mxu0 %v3746_v21 }
0x15f7   :  { %3525 = vmatprep.subr.bf16.mxu0 %v4106_v42 }
0x15fa   :  { %3526 = vmatpush3.bf16.msra.mxu0 %v3747_v50 }
0x1671   :  { %v2834_v2 = vpop.xlane.xlu0 %2833 }
0x1672   :  { %v2835_v37 = vmul.f32 0.0078125, %v2834_v2 }
0x1674   :  { %v2836_v3 = vsub.f32 %v2830_v62, %v2835_v37 }
0x1676   :  { %v2837_v6 = vmul.f32 %v2836_v3, %v2836_v3 }
0x1678   :  { %v2838_v9 = vsel %vm2831_vm3, %v2837_v6, 0.0 }
0x1679   :  { %2839 = vadd.xlane.f32.xlu1 %v2838_v9 }
0x1702   :  { %v2840_v30 = vpop.xlane.xlu1 %2839 }
0x1703   :  { %v2841_v27 = vmul.f32 0.0078125, %v2840_v30 }
0x1705   :  { %v2842_v32 = vadd.f32 1e-12, %v2841_v27 }
0x1707   :  { %3868 = vrsqrt.f32 %v2842_v32 }
0x1714   :  { %v3869_v35 = vpop.eup %3868 }
0x1715   :  { %v2844_v36 = vmul.f32 %v3869_v35, %v2836_v3 }
0x1717   :  { %v2845_v34 = vmul.f32 %v2844_v36, %v409_v57 }
0x1719   :  { %v2846_v43 = vadd.f32 %v2845_v34, %v410_v40 }
0x171b   :  { %v2847_v1 = vpack.c.bf16 %v2846_v43, %v2846_v43 }
0x171d   :  { %3528 = vmatmul.mubr.bf16.vlgmr.msra.gmra.mxu0 %v2847_v1 }
0x17dd   :  { %v2930_v10 = vpop.f32.mrf.mxu0 }
0x17de   :  { %v2931_v25 = vadd.f32 %v2930_v10, %v177_v13 }
0x17df   :  { %v3529_v47 = vpop.f32.mrf.mxu0 }
0x17e0   :  { %3870 = vtanh.f32 %v2931_v25 }
0x17e1   :  { %v2933_v16 = vpop.f32.mrf.mxu0 }
0x17e3   :  { %v3530_v26 = vpop.f32.mrf.mxu0 }
0x17ed   :  { %v3871_v17 = vpop.eup %3870 }
0x17ee   :  { %v2937_v4 = vmul.f32 %v3871_v17, %v419_v8 }
0x17f0   :  { %v2938_v7 = vpack.c.bf16 %v2937_v4, %v2937_v4 }
0x17f2   :  { %3548 = vmatmul.mubr.bf16.vlgmr.msra.gmra.mxu1 %v2938_v7 }
0x18b2   :  { %v3021_v12 = vpop.f32.mrf.mxu1 }
0x18b3   :  { %v3022_v28 = vadd.f32 %v3021_v12, %v194_v23 }
0x18b4   :  { %v3549_v15 = vpop.f32.mrf.mxu1 }
0x18b5   :  { %3027 = vst [vmem:[#allocation17] sm:$0x3] %v3022_v28 }
0x18b6   :  { %v3024_v31 = vpop.f32.mrf.mxu1 }
0x18b7   :  { %4067 = shalt.err (!%p4064_p7)
}
0x18b8   :  { %3037 = dma.vmem_to_hbm [thread:$0]  %s3035_s16, 32, %s4568_s10, [#allocation4]   ;;  %v3550_v5 = vpop.f32.mrf.mxu1 }
0x18b9   :  { %4086 = dma.done.wait [#allocation4], 32  }
0x18ba   :  { %4087 = vsyncadd [#allocation4], 4294967264 }
0x18bb   :  { %3041 = vsyncpa [#allocation3], 1 }
0x18bc   :  { %3042 = vsyncpa [#allocation6], 1 }
0x18bd   :  { %3043 = vsyncpa [#allocation9], 1 }
0x18be   :  { %3044 = vsyncpa [#allocation12], 1 }
0x18bf   :  { %3045 = vsyncpa [#allocation15], 1 }
0x18c0   :  { %3046 = vsyncpa [#allocation4], 1 }

</bundles_post_ra>
